<compile_context>
chip_gen: v6e
topology: v6e:2x2x1
jax: 0.10.0
libtpu: 0.0.40
codegen_flags: <defaults>
</compile_context>

<pallas_src>
import jax
import jax.numpy as jnp
from jax import lax
from jax.experimental import pallas as pl
from jax.experimental.pallas import tpu as pltpu

# ---- model hyperparameters (small, consistent with the module's forward) ----
VOCAB_SIZE = 50
EMBED_DIM = 32
HIDDEN_DIM = 32
OUTPUT_SIZE = 1
N_LAYERS = 1
BATCH = 4
SEQ_LEN = 8
LANES = 128  # padded gate width: lanes [0:32)=r, [32:64)=z, [64:96)=n, [96:128)=0


def _make_gru_kernel(B, T, H):
    def kernel(tokens_ref,   # SMEM (B, T) int32  token ids
               table_ref,    # VMEM (V, 1, 128)   embedding @ W_ih + folded biases
               h0_ref,       # VMEM (B, H)        initial hidden state
               wslab_ref,    # VMEM (40, 128)     rows 0:H=W_hh, H=b_hn, H+1=w_fc, H+2=b_fc
               out_ref,      # VMEM (B, 128)      lanes 0:H = h_T, lanes H: = sigmoid(fc(h_T))
               xg_ref):      # VMEM scratch (T, B, 128) per-token gate pre-activations
        # ---- prologue: in-kernel embedding+input-projection gather (off the h-chain) ----
        for t in range(T):
            for b in range(B):
                xg_ref[t, b:b + 1, :] = table_ref[tokens_ref[b, t]]

        # Loop-invariant weight reads hoisted out of the recurrence.
        whh = wslab_ref[:H, :]               # (H, 128) stacked [r|z|n|0], lane-dense
        b_hn = wslab_ref[H:H + 1, :H]        # (1, H)   must stay inside the r*(...) term
        w_fc = wslab_ref[H + 1:H + 2, :H]    # (1, H)
        b_fc = wslab_ref[H + 2:H + 3, :1]    # (1, 1)

        def step(t, h):
            xg = xg_ref[t]                                               # (B, 128)
            # Single fused MXU pass per timestep on the serial chain.
            hg = jnp.dot(h, whh, preferred_element_type=jnp.float32)    # (B, 128)
            # One EUP pass over the fused r|z slab (b_ih, b_hr, b_hz already in xg).
            rz = jax.nn.sigmoid(xg[:, :2 * H] + hg[:, :2 * H])          # (B, 2H)
            r = rz[:, :H]
            z = rz[:, H:]
            # PyTorch GRU: n = tanh(W_in x + b_in + r * (W_hn h + b_hn))
            n = jnp.tanh(xg[:, 2 * H:3 * H] + r * (hg[:, 2 * H:3 * H] + b_hn))
            return (1.0 - z) * n + z * h

        # T=8 static: full unroll gives the scheduler cross-iteration visibility.
        h_final = lax.fori_loop(0, T, step, h0_ref[...], unroll=True)

        # fc + sigmoid on the last step (out[:, -1, :] == h_T for a 1-layer GRU).
        # VPU multiply + lane reduction — no N=1 MXU pass on the kernel tail.
        # TODO(synk): nn.Dropout(p=0.5) before fc is treated as identity (eval mode).
        logits = jnp.sum(h_final * w_fc, axis=1, keepdims=True) + b_fc  # (B, 1)
        sig = jax.nn.sigmoid(logits)

        out_ref[:, :H] = h_final
        out_ref[:, H:] = jnp.broadcast_to(sig, (B, LANES - H))

    return kernel


def pack_params(params):
    """One-time packing of weights (hoisted out of the per-call forward)."""
    H = HIDDEN_DIM
    # Fold b_ih fully, and b_hh only for the r,z gates, into the per-token table;
    # b_hn stays in-kernel (it sits inside the r * (W_hn h + b_hn) term).
    b_fold = params["b_ih"] + params["b_hh"].at[:, 2 * H:].set(0.0)      # (1, 3H)
    table = params["embedding"] @ params["w_ih"] + b_fold                # (V, 3H)
    table_pad = jnp.zeros((VOCAB_SIZE, 1, LANES), jnp.float32)
    table_pad = table_pad.at[:, 0, :3 * H].set(table)                    # (V, 1, 128)

    # One lane-dense slab for everything else: W_hh, b_hn, w_fc, b_fc.
    wslab = jnp.zeros((40, LANES), jnp.float32)
    wslab = wslab.at[:H, :3 * H].set(params["w_hh"])                     # rows 0:H
    wslab = wslab.at[H, :H].set(params["b_hh"][0, 2 * H:])               # b_hn
    wslab = wslab.at[H + 1, :H].set(params["w_fc"][:, 0])                # w_fc
    wslab = wslab.at[H + 2, 0].set(params["b_fc"][0, 0])                 # b_fc
    return {"table": table_pad, "wslab": wslab}


def rnn_model_forward(x_tokens, hidden, packed):
    """Mirrors RNN_model.forward: returns (sig_out[:, -1], hidden)."""
    B, T = x_tokens.shape
    H = HIDDEN_DIM
    hidden = hidden[:, :B, :]                 # PyTorch: trim hidden to batch size

    kernel = _make_gru_kernel(B, T, H)
    smem = pl.BlockSpec(memory_space=pltpu.MemorySpace.SMEM)
    vmem = pl.BlockSpec(memory_space=pltpu.MemorySpace.VMEM)

    out = pl.pallas_call(
        kernel,
        out_shape=jax.ShapeDtypeStruct((B, LANES), jnp.float32),
        in_specs=[smem, vmem, vmem, vmem],
        out_specs=vmem,
        scratch_shapes=[pltpu.VMEM((T, B, LANES), jnp.float32)],
    )(x_tokens.astype(jnp.int32), packed["table"],
      hidden[0].astype(jnp.float32), packed["wslab"])

    sig_out_last = out[:, H]                  # (B,)  == sigmoid(fc(out))[:, -1]
    new_hidden = out[:, :H][None, :, :]       # (1, B, H)
    return sig_out_last, new_hidden


def init_params(key):
    k_emb, k_wih, k_whh, k_bih, k_bhh, k_wfc, k_bfc = jax.random.split(key, 7)
    bound = 1.0 / jnp.sqrt(HIDDEN_DIM)
    u = lambda k, shape: jax.random.uniform(k, shape, jnp.float32, -bound, bound)
    return {
        # nn.Embedding default init: N(0, 1)
        "embedding": jax.random.normal(k_emb, (VOCAB_SIZE, EMBED_DIM), jnp.float32),
        # GRU weights in PyTorch gate order [r | z | n], stacked lane-dense and
        # pre-transposed so projections are x @ W (equivalent to W x in PyTorch).
        "w_ih": u(k_wih, (EMBED_DIM, 3 * HIDDEN_DIM)),
        "w_hh": u(k_whh, (HIDDEN_DIM, 3 * HIDDEN_DIM)),
        "b_ih": u(k_bih, (1, 3 * HIDDEN_DIM)),
        "b_hh": u(k_bhh, (1, 3 * HIDDEN_DIM)),
        # nn.Linear(hidden_dim, 1)
        "w_fc": u(k_wfc, (HIDDEN_DIM, OUTPUT_SIZE)),
        "b_fc": u(k_bfc, (1, OUTPUT_SIZE)),
    }


if __name__ == "__main__":
    key = jax.random.PRNGKey(0)
    k_params, k_tokens = jax.random.split(key)
    params = init_params(k_params)
    packed = pack_params(params)              # one-time; NOT re-done per forward call

    x_tokens = jax.random.randint(k_tokens, (BATCH, SEQ_LEN), 0, VOCAB_SIZE, jnp.int32)
    hidden0 = jnp.zeros((N_LAYERS, BATCH, HIDDEN_DIM), jnp.float32)  # init_hidden()

    fwd = jax.jit(rnn_model_forward)
    sig_out, hidden = fwd(x_tokens, hidden0, packed)
    jax.block_until_ready((sig_out, hidden))

    assert sig_out.shape == (BATCH,)
    assert hidden.shape == (N_LAYERS, BATCH, HIDDEN_DIM)
    assert bool(jnp.all(jnp.isfinite(sig_out))) and bool(jnp.all(jnp.isfinite(hidden)))
    print("KERNEL_OK")
</pallas_src>

<mosaic_0001>
module attributes {stable_mosaic.version = 11 : i64} {
  func.func @kernel(%arg0: memref<4x8xi32, #tpu.memory_space<smem>>, %arg1: memref<50x1x128xf32, #tpu.memory_space<vmem>>, %arg2: memref<4x32xf32, #tpu.memory_space<vmem>>, %arg3: memref<40x128xf32, #tpu.memory_space<vmem>>, %arg4: memref<4x128xf32, #tpu.memory_space<vmem>>, %arg5: memref<8x4x128xf32, #tpu.memory_space<vmem>>) attributes {dimension_semantics = [], scalar_prefetch = 0 : i64, scratch_operands = 1 : i64, tpu.core_type = #tpu.core_type<tc>} {
    %c0 = arith.constant 0 : index
    %c0_0 = arith.constant 0 : index
    %0 = memref.load %arg0[%c0, %c0_0] : memref<4x8xi32, #tpu.memory_space<smem>>
    %1 = arith.index_cast %0 : i32 to index
    %c0_1 = arith.constant 0 : index
    %c0_2 = arith.constant 0 : index
    %2 = vector.load %arg1[%1, %c0_1, %c0_2] : memref<50x1x128xf32, #tpu.memory_space<vmem>>, vector<1x1x128xf32>
    %3 = vector.shape_cast %2 : vector<1x1x128xf32> to vector<1x128xf32>
    %c0_3 = arith.constant 0 : index
    %c0_4 = arith.constant 0 : index
    %c0_5 = arith.constant 0 : index
    %4 = vector.load %arg5[%c0_3, %c0_4, %c0_5] : memref<8x4x128xf32, #tpu.memory_space<vmem>>, vector<1x1x128xf32>
    %5 = vector.shape_cast %4 : vector<1x1x128xf32> to vector<1x128xf32>
    %6 = vector.shape_cast %3 : vector<1x128xf32> to vector<1x1x128xf32>
    tpu.vector_store %arg5[%c0_3, %c0_4, %c0_5], %6 {strides = array<i32>} : memref<8x4x128xf32, #tpu.memory_space<vmem>>, vector<1x1x128xf32>,
    %c1 = arith.constant 1 : index
    %c0_6 = arith.constant 0 : index
    %7 = memref.load %arg0[%c1, %c0_6] : memref<4x8xi32, #tpu.memory_space<smem>>
    %8 = arith.index_cast %7 : i32 to index
    %c0_7 = arith.constant 0 : index
    %c0_8 = arith.constant 0 : index
    %9 = vector.load %arg1[%8, %c0_7, %c0_8] : memref<50x1x128xf32, #tpu.memory_space<vmem>>, vector<1x1x128xf32>
    %10 = vector.shape_cast %9 : vector<1x1x128xf32> to vector<1x128xf32>
    %c0_9 = arith.constant 0 : index
    %c1_10 = arith.constant 1 : index
    %c0_11 = arith.constant 0 : index
    %11 = vector.load %arg5[%c0_9, %c1_10, %c0_11] : memref<8x4x128xf32, #tpu.memory_space<vmem>>, vector<1x1x128xf32>
    %12 = vector.shape_cast %11 : vector<1x1x128xf32> to vector<1x128xf32>
    %13 = vector.shape_cast %10 : vector<1x128xf32> to vector<1x1x128xf32>
    tpu.vector_store %arg5[%c0_9, %c1_10, %c0_11], %13 {strides = array<i32>} : memref<8x4x128xf32, #tpu.memory_space<vmem>>, vector<1x1x128xf32>,
    %c2 = arith.constant 2 : index
    %c0_12 = arith.constant 0 : index
    %14 = memref.load %arg0[%c2, %c0_12] : memref<4x8xi32, #tpu.memory_space<smem>>
    %15 = arith.index_cast %14 : i32 to index
    %c0_13 = arith.constant 0 : index
    %c0_14 = arith.constant 0 : index
    %16 = vector.load %arg1[%15, %c0_13, %c0_14] : memref<50x1x128xf32, #tpu.memory_space<vmem>>, vector<1x1x128xf32>
    %17 = vector.shape_cast %16 : vector<1x1x128xf32> to vector<1x128xf32>
    %c0_15 = arith.constant 0 : index
    %c2_16 = arith.constant 2 : index
    %c0_17 = arith.constant 0 : index
    %18 = vector.load %arg5[%c0_15, %c2_16, %c0_17] : memref<8x4x128xf32, #tpu.memory_space<vmem>>, vector<1x1x128xf32>
    %19 = vector.shape_cast %18 : vector<1x1x128xf32> to vector<1x128xf32>
    %20 = vector.shape_cast %17 : vector<1x128xf32> to vector<1x1x128xf32>
    tpu.vector_store %arg5[%c0_15, %c2_16, %c0_17], %20 {strides = array<i32>} : memref<8x4x128xf32, #tpu.memory_space<vmem>>, vector<1x1x128xf32>,
    %c3 = arith.constant 3 : index
    %c0_18 = arith.constant 0 : index
    %21 = memref.load %arg0[%c3, %c0_18] : memref<4x8xi32, #tpu.memory_space<smem>>
    %22 = arith.index_cast %21 : i32 to index
    %c0_19 = arith.constant 0 : index
    %c0_20 = arith.constant 0 : index
    %23 = vector.load %arg1[%22, %c0_19, %c0_20] : memref<50x1x128xf32, #tpu.memory_space<vmem>>, vector<1x1x128xf32>
    %24 = vector.shape_cast %23 : vector<1x1x128xf32> to vector<1x128xf32>
    %c0_21 = arith.constant 0 : index
    %c3_22 = arith.constant 3 : index
    %c0_23 = arith.constant 0 : index
    %25 = vector.load %arg5[%c0_21, %c3_22, %c0_23] : memref<8x4x128xf32, #tpu.memory_space<vmem>>, vector<1x1x128xf32>
    %26 = vector.shape_cast %25 : vector<1x1x128xf32> to vector<1x128xf32>
    %27 = vector.shape_cast %24 : vector<1x128xf32> to vector<1x1x128xf32>
    tpu.vector_store %arg5[%c0_21, %c3_22, %c0_23], %27 {strides = array<i32>} : memref<8x4x128xf32, #tpu.memory_space<vmem>>, vector<1x1x128xf32>,
    %c0_24 = arith.constant 0 : index
    %c1_25 = arith.constant 1 : index
    %28 = memref.load %arg0[%c0_24, %c1_25] : memref<4x8xi32, #tpu.memory_space<smem>>
    %29 = arith.index_cast %28 : i32 to index
    %c0_26 = arith.constant 0 : index
    %c0_27 = arith.constant 0 : index
    %30 = vector.load %arg1[%29, %c0_26, %c0_27] : memref<50x1x128xf32, #tpu.memory_space<vmem>>, vector<1x1x128xf32>
    %31 = vector.shape_cast %30 : vector<1x1x128xf32> to vector<1x128xf32>
    %c1_28 = arith.constant 1 : index
    %c0_29 = arith.constant 0 : index
    %c0_30 = arith.constant 0 : index
    %32 = vector.load %arg5[%c1_28, %c0_29, %c0_30] : memref<8x4x128xf32, #tpu.memory_space<vmem>>, vector<1x1x128xf32>
    %33 = vector.shape_cast %32 : vector<1x1x128xf32> to vector<1x128xf32>
    %34 = vector.shape_cast %31 : vector<1x128xf32> to vector<1x1x128xf32>
    tpu.vector_store %arg5[%c1_28, %c0_29, %c0_30], %34 {strides = array<i32>} : memref<8x4x128xf32, #tpu.memory_space<vmem>>, vector<1x1x128xf32>,
    %c1_31 = arith.constant 1 : index
    %c1_32 = arith.constant 1 : index
    %35 = memref.load %arg0[%c1_31, %c1_32] : memref<4x8xi32, #tpu.memory_space<smem>>
    %36 = arith.index_cast %35 : i32 to index
    %c0_33 = arith.constant 0 : index
    %c0_34 = arith.constant 0 : index
    %37 = vector.load %arg1[%36, %c0_33, %c0_34] : memref<50x1x128xf32, #tpu.memory_space<vmem>>, vector<1x1x128xf32>
    %38 = vector.shape_cast %37 : vector<1x1x128xf32> to vector<1x128xf32>
    %c1_35 = arith.constant 1 : index
    %c1_36 = arith.constant 1 : index
    %c0_37 = arith.constant 0 : index
    %39 = vector.load %arg5[%c1_35, %c1_36, %c0_37] : memref<8x4x128xf32, #tpu.memory_space<vmem>>, vector<1x1x128xf32>
    %40 = vector.shape_cast %39 : vector<1x1x128xf32> to vector<1x128xf32>
    %41 = vector.shape_cast %38 : vector<1x128xf32> to vector<1x1x128xf32>
    tpu.vector_store %arg5[%c1_35, %c1_36, %c0_37], %41 {strides = array<i32>} : memref<8x4x128xf32, #tpu.memory_space<vmem>>, vector<1x1x128xf32>,
    %c2_38 = arith.constant 2 : index
    %c1_39 = arith.constant 1 : index
    %42 = memref.load %arg0[%c2_38, %c1_39] : memref<4x8xi32, #tpu.memory_space<smem>>
    %43 = arith.index_cast %42 : i32 to index
    %c0_40 = arith.constant 0 : index
    %c0_41 = arith.constant 0 : index
    %44 = vector.load %arg1[%43, %c0_40, %c0_41] : memref<50x1x128xf32, #tpu.memory_space<vmem>>, vector<1x1x128xf32>
    %45 = vector.shape_cast %44 : vector<1x1x128xf32> to vector<1x128xf32>
    %c1_42 = arith.constant 1 : index
    %c2_43 = arith.constant 2 : index
    %c0_44 = arith.constant 0 : index
    %46 = vector.load %arg5[%c1_42, %c2_43, %c0_44] : memref<8x4x128xf32, #tpu.memory_space<vmem>>, vector<1x1x128xf32>
    %47 = vector.shape_cast %46 : vector<1x1x128xf32> to vector<1x128xf32>
    %48 = vector.shape_cast %45 : vector<1x128xf32> to vector<1x1x128xf32>
    tpu.vector_store %arg5[%c1_42, %c2_43, %c0_44], %48 {strides = array<i32>} : memref<8x4x128xf32, #tpu.memory_space<vmem>>, vector<1x1x128xf32>,
    %c3_45 = arith.constant 3 : index
    %c1_46 = arith.constant 1 : index
    %49 = memref.load %arg0[%c3_45, %c1_46] : memref<4x8xi32, #tpu.memory_space<smem>>
    %50 = arith.index_cast %49 : i32 to index
    %c0_47 = arith.constant 0 : index
    %c0_48 = arith.constant 0 : index
    %51 = vector.load %arg1[%50, %c0_47, %c0_48] : memref<50x1x128xf32, #tpu.memory_space<vmem>>, vector<1x1x128xf32>
    %52 = vector.shape_cast %51 : vector<1x1x128xf32> to vector<1x128xf32>
    %c1_49 = arith.constant 1 : index
    %c3_50 = arith.constant 3 : index
    %c0_51 = arith.constant 0 : index
    %53 = vector.load %arg5[%c1_49, %c3_50, %c0_51] : memref<8x4x128xf32, #tpu.memory_space<vmem>>, vector<1x1x128xf32>
    %54 = vector.shape_cast %53 : vector<1x1x128xf32> to vector<1x128xf32>
    %55 = vector.shape_cast %52 : vector<1x128xf32> to vector<1x1x128xf32>
    tpu.vector_store %arg5[%c1_49, %c3_50, %c0_51], %55 {strides = array<i32>} : memref<8x4x128xf32, #tpu.memory_space<vmem>>, vector<1x1x128xf32>,
    %c0_52 = arith.constant 0 : index
    %c2_53 = arith.constant 2 : index
    %56 = memref.load %arg0[%c0_52, %c2_53] : memref<4x8xi32, #tpu.memory_space<smem>>
    %57 = arith.index_cast %56 : i32 to index
    %c0_54 = arith.constant 0 : index
    %c0_55 = arith.constant 0 : index
    %58 = vector.load %arg1[%57, %c0_54, %c0_55] : memref<50x1x128xf32, #tpu.memory_space<vmem>>, vector<1x1x128xf32>
    %59 = vector.shape_cast %58 : vector<1x1x128xf32> to vector<1x128xf32>
    %c2_56 = arith.constant 2 : index
    %c0_57 = arith.constant 0 : index
    %c0_58 = arith.constant 0 : index
    %60 = vector.load %arg5[%c2_56, %c0_57, %c0_58] : memref<8x4x128xf32, #tpu.memory_space<vmem>>, vector<1x1x128xf32>
    %61 = vector.shape_cast %60 : vector<1x1x128xf32> to vector<1x128xf32>
    %62 = vector.shape_cast %59 : vector<1x128xf32> to vector<1x1x128xf32>
    tpu.vector_store %arg5[%c2_56, %c0_57, %c0_58], %62 {strides = array<i32>} : memref<8x4x128xf32, #tpu.memory_space<vmem>>, vector<1x1x128xf32>,
    %c1_59 = arith.constant 1 : index
    %c2_60 = arith.constant 2 : index
    %63 = memref.load %arg0[%c1_59, %c2_60] : memref<4x8xi32, #tpu.memory_space<smem>>
    %64 = arith.index_cast %63 : i32 to index
    %c0_61 = arith.constant 0 : index
    %c0_62 = arith.constant 0 : index
    %65 = vector.load %arg1[%64, %c0_61, %c0_62] : memref<50x1x128xf32, #tpu.memory_space<vmem>>, vector<1x1x128xf32>
    %66 = vector.shape_cast %65 : vector<1x1x128xf32> to vector<1x128xf32>
    %c2_63 = arith.constant 2 : index
    %c1_64 = arith.constant 1 : index
    %c0_65 = arith.constant 0 : index
    %67 = vector.load %arg5[%c2_63, %c1_64, %c0_65] : memref<8x4x128xf32, #tpu.memory_space<vmem>>, vector<1x1x128xf32>
    %68 = vector.shape_cast %67 : vector<1x1x128xf32> to vector<1x128xf32>
    %69 = vector.shape_cast %66 : vector<1x128xf32> to vector<1x1x128xf32>
    tpu.vector_store %arg5[%c2_63, %c1_64, %c0_65], %69 {strides = array<i32>} : memref<8x4x128xf32, #tpu.memory_space<vmem>>, vector<1x1x128xf32>,
    %c2_66 = arith.constant 2 : index
    %c2_67 = arith.constant 2 : index
    %70 = memref.load %arg0[%c2_66, %c2_67] : memref<4x8xi32, #tpu.memory_space<smem>>
    %71 = arith.index_cast %70 : i32 to index
    %c0_68 = arith.constant 0 : index
    %c0_69 = arith.constant 0 : index
    %72 = vector.load %arg1[%71, %c0_68, %c0_69] : memref<50x1x128xf32, #tpu.memory_space<vmem>>, vector<1x1x128xf32>
    %73 = vector.shape_cast %72 : vector<1x1x128xf32> to vector<1x128xf32>
    %c2_70 = arith.constant 2 : index
    %c2_71 = arith.constant 2 : index
    %c0_72 = arith.constant 0 : index
    %74 = vector.load %arg5[%c2_70, %c2_71, %c0_72] : memref<8x4x128xf32, #tpu.memory_space<vmem>>, vector<1x1x128xf32>
    %75 = vector.shape_cast %74 : vector<1x1x128xf32> to vector<1x128xf32>
    %76 = vector.shape_cast %73 : vector<1x128xf32> to vector<1x1x128xf32>
    tpu.vector_store %arg5[%c2_70, %c2_71, %c0_72], %76 {strides = array<i32>} : memref<8x4x128xf32, #tpu.memory_space<vmem>>, vector<1x1x128xf32>,
    %c3_73 = arith.constant 3 : index
    %c2_74 = arith.constant 2 : index
    %77 = memref.load %arg0[%c3_73, %c2_74] : memref<4x8xi32, #tpu.memory_space<smem>>
    %78 = arith.index_cast %77 : i32 to index
    %c0_75 = arith.constant 0 : index
    %c0_76 = arith.constant 0 : index
    %79 = vector.load %arg1[%78, %c0_75, %c0_76] : memref<50x1x128xf32, #tpu.memory_space<vmem>>, vector<1x1x128xf32>
    %80 = vector.shape_cast %79 : vector<1x1x128xf32> to vector<1x128xf32>
    %c2_77 = arith.constant 2 : index
    %c3_78 = arith.constant 3 : index
    %c0_79 = arith.constant 0 : index
    %81 = vector.load %arg5[%c2_77, %c3_78, %c0_79] : memref<8x4x128xf32, #tpu.memory_space<vmem>>, vector<1x1x128xf32>
    %82 = vector.shape_cast %81 : vector<1x1x128xf32> to vector<1x128xf32>
    %83 = vector.shape_cast %80 : vector<1x128xf32> to vector<1x1x128xf32>
    tpu.vector_store %arg5[%c2_77, %c3_78, %c0_79], %83 {strides = array<i32>} : memref<8x4x128xf32, #tpu.memory_space<vmem>>, vector<1x1x128xf32>,
    %c0_80 = arith.constant 0 : index
    %c3_81 = arith.constant 3 : index
    %84 = memref.load %arg0[%c0_80, %c3_81] : memref<4x8xi32, #tpu.memory_space<smem>>
    %85 = arith.index_cast %84 : i32 to index
    %c0_82 = arith.constant 0 : index
    %c0_83 = arith.constant 0 : index
    %86 = vector.load %arg1[%85, %c0_82, %c0_83] : memref<50x1x128xf32, #tpu.memory_space<vmem>>, vector<1x1x128xf32>
    %87 = vector.shape_cast %86 : vector<1x1x128xf32> to vector<1x128xf32>
    %c3_84 = arith.constant 3 : index
    %c0_85 = arith.constant 0 : index
    %c0_86 = arith.constant 0 : index
    %88 = vector.load %arg5[%c3_84, %c0_85, %c0_86] : memref<8x4x128xf32, #tpu.memory_space<vmem>>, vector<1x1x128xf32>
    %89 = vector.shape_cast %88 : vector<1x1x128xf32> to vector<1x128xf32>
    %90 = vector.shape_cast %87 : vector<1x128xf32> to vector<1x1x128xf32>
    tpu.vector_store %arg5[%c3_84, %c0_85, %c0_86], %90 {strides = array<i32>} : memref<8x4x128xf32, #tpu.memory_space<vmem>>, vector<1x1x128xf32>,
    %c1_87 = arith.constant 1 : index
    %c3_88 = arith.constant 3 : index
    %91 = memref.load %arg0[%c1_87, %c3_88] : memref<4x8xi32, #tpu.memory_space<smem>>
    %92 = arith.index_cast %91 : i32 to index
    %c0_89 = arith.constant 0 : index
    %c0_90 = arith.constant 0 : index
    %93 = vector.load %arg1[%92, %c0_89, %c0_90] : memref<50x1x128xf32, #tpu.memory_space<vmem>>, vector<1x1x128xf32>
    %94 = vector.shape_cast %93 : vector<1x1x128xf32> to vector<1x128xf32>
    %c3_91 = arith.constant 3 : index
    %c1_92 = arith.constant 1 : index
    %c0_93 = arith.constant 0 : index
    %95 = vector.load %arg5[%c3_91, %c1_92, %c0_93] : memref<8x4x128xf32, #tpu.memory_space<vmem>>, vector<1x1x128xf32>
    %96 = vector.shape_cast %95 : vector<1x1x128xf32> to vector<1x128xf32>
    %97 = vector.shape_cast %94 : vector<1x128xf32> to vector<1x1x128xf32>
    tpu.vector_store %arg5[%c3_91, %c1_92, %c0_93], %97 {strides = array<i32>} : memref<8x4x128xf32, #tpu.memory_space<vmem>>, vector<1x1x128xf32>,
    %c2_94 = arith.constant 2 : index
    %c3_95 = arith.constant 3 : index
    %98 = memref.load %arg0[%c2_94, %c3_95] : memref<4x8xi32, #tpu.memory_space<smem>>
    %99 = arith.index_cast %98 : i32 to index
    %c0_96 = arith.constant 0 : index
    %c0_97 = arith.constant 0 : index
    %100 = vector.load %arg1[%99, %c0_96, %c0_97] : memref<50x1x128xf32, #tpu.memory_space<vmem>>, vector<1x1x128xf32>
    %101 = vector.shape_cast %100 : vector<1x1x128xf32> to vector<1x128xf32>
    %c3_98 = arith.constant 3 : index
    %c2_99 = arith.constant 2 : index
    %c0_100 = arith.constant 0 : index
    %102 = vector.load %arg5[%c3_98, %c2_99, %c0_100] : memref<8x4x128xf32, #tpu.memory_space<vmem>>, vector<1x1x128xf32>
    %103 = vector.shape_cast %102 : vector<1x1x128xf32> to vector<1x128xf32>
    %104 = vector.shape_cast %101 : vector<1x128xf32> to vector<1x1x128xf32>
    tpu.vector_store %arg5[%c3_98, %c2_99, %c0_100], %104 {strides = array<i32>} : memref<8x4x128xf32, #tpu.memory_space<vmem>>, vector<1x1x128xf32>,
    %c3_101 = arith.constant 3 : index
    %c3_102 = arith.constant 3 : index
    %105 = memref.load %arg0[%c3_101, %c3_102] : memref<4x8xi32, #tpu.memory_space<smem>>
    %106 = arith.index_cast %105 : i32 to index
    %c0_103 = arith.constant 0 : index
    %c0_104 = arith.constant 0 : index
    %107 = vector.load %arg1[%106, %c0_103, %c0_104] : memref<50x1x128xf32, #tpu.memory_space<vmem>>, vector<1x1x128xf32>
    %108 = vector.shape_cast %107 : vector<1x1x128xf32> to vector<1x128xf32>
    %c3_105 = arith.constant 3 : index
    %c3_106 = arith.constant 3 : index
    %c0_107 = arith.constant 0 : index
    %109 = vector.load %arg5[%c3_105, %c3_106, %c0_107] : memref<8x4x128xf32, #tpu.memory_space<vmem>>, vector<1x1x128xf32>
    %110 = vector.shape_cast %109 : vector<1x1x128xf32> to vector<1x128xf32>
    %111 = vector.shape_cast %108 : vector<1x128xf32> to vector<1x1x128xf32>
    tpu.vector_store %arg5[%c3_105, %c3_106, %c0_107], %111 {strides = array<i32>} : memref<8x4x128xf32, #tpu.memory_space<vmem>>, vector<1x1x128xf32>,
    %c0_108 = arith.constant 0 : index
    %c4 = arith.constant 4 : index
    %112 = memref.load %arg0[%c0_108, %c4] : memref<4x8xi32, #tpu.memory_space<smem>>
    %113 = arith.index_cast %112 : i32 to index
    %c0_109 = arith.constant 0 : index
    %c0_110 = arith.constant 0 : index
    %114 = vector.load %arg1[%113, %c0_109, %c0_110] : memref<50x1x128xf32, #tpu.memory_space<vmem>>, vector<1x1x128xf32>
    %115 = vector.shape_cast %114 : vector<1x1x128xf32> to vector<1x128xf32>
    %c4_111 = arith.constant 4 : index
    %c0_112 = arith.constant 0 : index
    %c0_113 = arith.constant 0 : index
    %116 = vector.load %arg5[%c4_111, %c0_112, %c0_113] : memref<8x4x128xf32, #tpu.memory_space<vmem>>, vector<1x1x128xf32>
    %117 = vector.shape_cast %116 : vector<1x1x128xf32> to vector<1x128xf32>
    %118 = vector.shape_cast %115 : vector<1x128xf32> to vector<1x1x128xf32>
    tpu.vector_store %arg5[%c4_111, %c0_112, %c0_113], %118 {strides = array<i32>} : memref<8x4x128xf32, #tpu.memory_space<vmem>>, vector<1x1x128xf32>,
    %c1_114 = arith.constant 1 : index
    %c4_115 = arith.constant 4 : index
    %119 = memref.load %arg0[%c1_114, %c4_115] : memref<4x8xi32, #tpu.memory_space<smem>>
    %120 = arith.index_cast %119 : i32 to index
    %c0_116 = arith.constant 0 : index
    %c0_117 = arith.constant 0 : index
    %121 = vector.load %arg1[%120, %c0_116, %c0_117] : memref<50x1x128xf32, #tpu.memory_space<vmem>>, vector<1x1x128xf32>
    %122 = vector.shape_cast %121 : vector<1x1x128xf32> to vector<1x128xf32>
    %c4_118 = arith.constant 4 : index
    %c1_119 = arith.constant 1 : index
    %c0_120 = arith.constant 0 : index
    %123 = vector.load %arg5[%c4_118, %c1_119, %c0_120] : memref<8x4x128xf32, #tpu.memory_space<vmem>>, vector<1x1x128xf32>
    %124 = vector.shape_cast %123 : vector<1x1x128xf32> to vector<1x128xf32>
    %125 = vector.shape_cast %122 : vector<1x128xf32> to vector<1x1x128xf32>
    tpu.vector_store %arg5[%c4_118, %c1_119, %c0_120], %125 {strides = array<i32>} : memref<8x4x128xf32, #tpu.memory_space<vmem>>, vector<1x1x128xf32>,
    %c2_121 = arith.constant 2 : index
    %c4_122 = arith.constant 4 : index
    %126 = memref.load %arg0[%c2_121, %c4_122] : memref<4x8xi32, #tpu.memory_space<smem>>
    %127 = arith.index_cast %126 : i32 to index
    %c0_123 = arith.constant 0 : index
    %c0_124 = arith.constant 0 : index
    %128 = vector.load %arg1[%127, %c0_123, %c0_124] : memref<50x1x128xf32, #tpu.memory_space<vmem>>, vector<1x1x128xf32>
    %129 = vector.shape_cast %128 : vector<1x1x128xf32> to vector<1x128xf32>
    %c4_125 = arith.constant 4 : index
    %c2_126 = arith.constant 2 : index
    %c0_127 = arith.constant 0 : index
    %130 = vector.load %arg5[%c4_125, %c2_126, %c0_127] : memref<8x4x128xf32, #tpu.memory_space<vmem>>, vector<1x1x128xf32>
    %131 = vector.shape_cast %130 : vector<1x1x128xf32> to vector<1x128xf32>
    %132 = vector.shape_cast %129 : vector<1x128xf32> to vector<1x1x128xf32>
    tpu.vector_store %arg5[%c4_125, %c2_126, %c0_127], %132 {strides = array<i32>} : memref<8x4x128xf32, #tpu.memory_space<vmem>>, vector<1x1x128xf32>,
    %c3_128 = arith.constant 3 : index
    %c4_129 = arith.constant 4 : index
    %133 = memref.load %arg0[%c3_128, %c4_129] : memref<4x8xi32, #tpu.memory_space<smem>>
    %134 = arith.index_cast %133 : i32 to index
    %c0_130 = arith.constant 0 : index
    %c0_131 = arith.constant 0 : index
    %135 = vector.load %arg1[%134, %c0_130, %c0_131] : memref<50x1x128xf32, #tpu.memory_space<vmem>>, vector<1x1x128xf32>
    %136 = vector.shape_cast %135 : vector<1x1x128xf32> to vector<1x128xf32>
    %c4_132 = arith.constant 4 : index
    %c3_133 = arith.constant 3 : index
    %c0_134 = arith.constant 0 : index
    %137 = vector.load %arg5[%c4_132, %c3_133, %c0_134] : memref<8x4x128xf32, #tpu.memory_space<vmem>>, vector<1x1x128xf32>
    %138 = vector.shape_cast %137 : vector<1x1x128xf32> to vector<1x128xf32>
    %139 = vector.shape_cast %136 : vector<1x128xf32> to vector<1x1x128xf32>
    tpu.vector_store %arg5[%c4_132, %c3_133, %c0_134], %139 {strides = array<i32>} : memref<8x4x128xf32, #tpu.memory_space<vmem>>, vector<1x1x128xf32>,
    %c0_135 = arith.constant 0 : index
    %c5 = arith.constant 5 : index
    %140 = memref.load %arg0[%c0_135, %c5] : memref<4x8xi32, #tpu.memory_space<smem>>
    %141 = arith.index_cast %140 : i32 to index
    %c0_136 = arith.constant 0 : index
    %c0_137 = arith.constant 0 : index
    %142 = vector.load %arg1[%141, %c0_136, %c0_137] : memref<50x1x128xf32, #tpu.memory_space<vmem>>, vector<1x1x128xf32>
    %143 = vector.shape_cast %142 : vector<1x1x128xf32> to vector<1x128xf32>
    %c5_138 = arith.constant 5 : index
    %c0_139 = arith.constant 0 : index
    %c0_140 = arith.constant 0 : index
    %144 = vector.load %arg5[%c5_138, %c0_139, %c0_140] : memref<8x4x128xf32, #tpu.memory_space<vmem>>, vector<1x1x128xf32>
    %145 = vector.shape_cast %144 : vector<1x1x128xf32> to vector<1x128xf32>
    %146 = vector.shape_cast %143 : vector<1x128xf32> to vector<1x1x128xf32>
    tpu.vector_store %arg5[%c5_138, %c0_139, %c0_140], %146 {strides = array<i32>} : memref<8x4x128xf32, #tpu.memory_space<vmem>>, vector<1x1x128xf32>,
    %c1_141 = arith.constant 1 : index
    %c5_142 = arith.constant 5 : index
    %147 = memref.load %arg0[%c1_141, %c5_142] : memref<4x8xi32, #tpu.memory_space<smem>>
    %148 = arith.index_cast %147 : i32 to index
    %c0_143 = arith.constant 0 : index
    %c0_144 = arith.constant 0 : index
    %149 = vector.load %arg1[%148, %c0_143, %c0_144] : memref<50x1x128xf32, #tpu.memory_space<vmem>>, vector<1x1x128xf32>
    %150 = vector.shape_cast %149 : vector<1x1x128xf32> to vector<1x128xf32>
    %c5_145 = arith.constant 5 : index
    %c1_146 = arith.constant 1 : index
    %c0_147 = arith.constant 0 : index
    %151 = vector.load %arg5[%c5_145, %c1_146, %c0_147] : memref<8x4x128xf32, #tpu.memory_space<vmem>>, vector<1x1x128xf32>
    %152 = vector.shape_cast %151 : vector<1x1x128xf32> to vector<1x128xf32>
    %153 = vector.shape_cast %150 : vector<1x128xf32> to vector<1x1x128xf32>
    tpu.vector_store %arg5[%c5_145, %c1_146, %c0_147], %153 {strides = array<i32>} : memref<8x4x128xf32, #tpu.memory_space<vmem>>, vector<1x1x128xf32>,
    %c2_148 = arith.constant 2 : index
    %c5_149 = arith.constant 5 : index
    %154 = memref.load %arg0[%c2_148, %c5_149] : memref<4x8xi32, #tpu.memory_space<smem>>
    %155 = arith.index_cast %154 : i32 to index
    %c0_150 = arith.constant 0 : index
    %c0_151 = arith.constant 0 : index
    %156 = vector.load %arg1[%155, %c0_150, %c0_151] : memref<50x1x128xf32, #tpu.memory_space<vmem>>, vector<1x1x128xf32>
    %157 = vector.shape_cast %156 : vector<1x1x128xf32> to vector<1x128xf32>
    %c5_152 = arith.constant 5 : index
    %c2_153 = arith.constant 2 : index
    %c0_154 = arith.constant 0 : index
    %158 = vector.load %arg5[%c5_152, %c2_153, %c0_154] : memref<8x4x128xf32, #tpu.memory_space<vmem>>, vector<1x1x128xf32>
    %159 = vector.shape_cast %158 : vector<1x1x128xf32> to vector<1x128xf32>
    %160 = vector.shape_cast %157 : vector<1x128xf32> to vector<1x1x128xf32>
    tpu.vector_store %arg5[%c5_152, %c2_153, %c0_154], %160 {strides = array<i32>} : memref<8x4x128xf32, #tpu.memory_space<vmem>>, vector<1x1x128xf32>,
    %c3_155 = arith.constant 3 : index
    %c5_156 = arith.constant 5 : index
    %161 = memref.load %arg0[%c3_155, %c5_156] : memref<4x8xi32, #tpu.memory_space<smem>>
    %162 = arith.index_cast %161 : i32 to index
    %c0_157 = arith.constant 0 : index
    %c0_158 = arith.constant 0 : index
    %163 = vector.load %arg1[%162, %c0_157, %c0_158] : memref<50x1x128xf32, #tpu.memory_space<vmem>>, vector<1x1x128xf32>
    %164 = vector.shape_cast %163 : vector<1x1x128xf32> to vector<1x128xf32>
    %c5_159 = arith.constant 5 : index
    %c3_160 = arith.constant 3 : index
    %c0_161 = arith.constant 0 : index
    %165 = vector.load %arg5[%c5_159, %c3_160, %c0_161] : memref<8x4x128xf32, #tpu.memory_space<vmem>>, vector<1x1x128xf32>
    %166 = vector.shape_cast %165 : vector<1x1x128xf32> to vector<1x128xf32>
    %167 = vector.shape_cast %164 : vector<1x128xf32> to vector<1x1x128xf32>
    tpu.vector_store %arg5[%c5_159, %c3_160, %c0_161], %167 {strides = array<i32>} : memref<8x4x128xf32, #tpu.memory_space<vmem>>, vector<1x1x128xf32>,
    %c0_162 = arith.constant 0 : index
    %c6 = arith.constant 6 : index
    %168 = memref.load %arg0[%c0_162, %c6] : memref<4x8xi32, #tpu.memory_space<smem>>
    %169 = arith.index_cast %168 : i32 to index
    %c0_163 = arith.constant 0 : index
    %c0_164 = arith.constant 0 : index
    %170 = vector.load %arg1[%169, %c0_163, %c0_164] : memref<50x1x128xf32, #tpu.memory_space<vmem>>, vector<1x1x128xf32>
    %171 = vector.shape_cast %170 : vector<1x1x128xf32> to vector<1x128xf32>
    %c6_165 = arith.constant 6 : index
    %c0_166 = arith.constant 0 : index
    %c0_167 = arith.constant 0 : index
    %172 = vector.load %arg5[%c6_165, %c0_166, %c0_167] : memref<8x4x128xf32, #tpu.memory_space<vmem>>, vector<1x1x128xf32>
    %173 = vector.shape_cast %172 : vector<1x1x128xf32> to vector<1x128xf32>
    %174 = vector.shape_cast %171 : vector<1x128xf32> to vector<1x1x128xf32>
    tpu.vector_store %arg5[%c6_165, %c0_166, %c0_167], %174 {strides = array<i32>} : memref<8x4x128xf32, #tpu.memory_space<vmem>>, vector<1x1x128xf32>,
    %c1_168 = arith.constant 1 : index
    %c6_169 = arith.constant 6 : index
    %175 = memref.load %arg0[%c1_168, %c6_169] : memref<4x8xi32, #tpu.memory_space<smem>>
    %176 = arith.index_cast %175 : i32 to index
    %c0_170 = arith.constant 0 : index
    %c0_171 = arith.constant 0 : index
    %177 = vector.load %arg1[%176, %c0_170, %c0_171] : memref<50x1x128xf32, #tpu.memory_space<vmem>>, vector<1x1x128xf32>
    %178 = vector.shape_cast %177 : vector<1x1x128xf32> to vector<1x128xf32>
    %c6_172 = arith.constant 6 : index
    %c1_173 = arith.constant 1 : index
    %c0_174 = arith.constant 0 : index
    %179 = vector.load %arg5[%c6_172, %c1_173, %c0_174] : memref<8x4x128xf32, #tpu.memory_space<vmem>>, vector<1x1x128xf32>
    %180 = vector.shape_cast %179 : vector<1x1x128xf32> to vector<1x128xf32>
    %181 = vector.shape_cast %178 : vector<1x128xf32> to vector<1x1x128xf32>
    tpu.vector_store %arg5[%c6_172, %c1_173, %c0_174], %181 {strides = array<i32>} : memref<8x4x128xf32, #tpu.memory_space<vmem>>, vector<1x1x128xf32>,
    %c2_175 = arith.constant 2 : index
    %c6_176 = arith.constant 6 : index
    %182 = memref.load %arg0[%c2_175, %c6_176] : memref<4x8xi32, #tpu.memory_space<smem>>
    %183 = arith.index_cast %182 : i32 to index
    %c0_177 = arith.constant 0 : index
    %c0_178 = arith.constant 0 : index
    %184 = vector.load %arg1[%183, %c0_177, %c0_178] : memref<50x1x128xf32, #tpu.memory_space<vmem>>, vector<1x1x128xf32>
    %185 = vector.shape_cast %184 : vector<1x1x128xf32> to vector<1x128xf32>
    %c6_179 = arith.constant 6 : index
    %c2_180 = arith.constant 2 : index
    %c0_181 = arith.constant 0 : index
    %186 = vector.load %arg5[%c6_179, %c2_180, %c0_181] : memref<8x4x128xf32, #tpu.memory_space<vmem>>, vector<1x1x128xf32>
    %187 = vector.shape_cast %186 : vector<1x1x128xf32> to vector<1x128xf32>
    %188 = vector.shape_cast %185 : vector<1x128xf32> to vector<1x1x128xf32>
    tpu.vector_store %arg5[%c6_179, %c2_180, %c0_181], %188 {strides = array<i32>} : memref<8x4x128xf32, #tpu.memory_space<vmem>>, vector<1x1x128xf32>,
    %c3_182 = arith.constant 3 : index
    %c6_183 = arith.constant 6 : index
    %189 = memref.load %arg0[%c3_182, %c6_183] : memref<4x8xi32, #tpu.memory_space<smem>>
    %190 = arith.index_cast %189 : i32 to index
    %c0_184 = arith.constant 0 : index
    %c0_185 = arith.constant 0 : index
    %191 = vector.load %arg1[%190, %c0_184, %c0_185] : memref<50x1x128xf32, #tpu.memory_space<vmem>>, vector<1x1x128xf32>
    %192 = vector.shape_cast %191 : vector<1x1x128xf32> to vector<1x128xf32>
    %c6_186 = arith.constant 6 : index
    %c3_187 = arith.constant 3 : index
    %c0_188 = arith.constant 0 : index
    %193 = vector.load %arg5[%c6_186, %c3_187, %c0_188] : memref<8x4x128xf32, #tpu.memory_space<vmem>>, vector<1x1x128xf32>
    %194 = vector.shape_cast %193 : vector<1x1x128xf32> to vector<1x128xf32>
    %195 = vector.shape_cast %192 : vector<1x128xf32> to vector<1x1x128xf32>
    tpu.vector_store %arg5[%c6_186, %c3_187, %c0_188], %195 {strides = array<i32>} : memref<8x4x128xf32, #tpu.memory_space<vmem>>, vector<1x1x128xf32>,
    %c0_189 = arith.constant 0 : index
    %c7 = arith.constant 7 : index
    %196 = memref.load %arg0[%c0_189, %c7] : memref<4x8xi32, #tpu.memory_space<smem>>
    %197 = arith.index_cast %196 : i32 to index
    %c0_190 = arith.constant 0 : index
    %c0_191 = arith.constant 0 : index
    %198 = vector.load %arg1[%197, %c0_190, %c0_191] : memref<50x1x128xf32, #tpu.memory_space<vmem>>, vector<1x1x128xf32>
    %199 = vector.shape_cast %198 : vector<1x1x128xf32> to vector<1x128xf32>
    %c7_192 = arith.constant 7 : index
    %c0_193 = arith.constant 0 : index
    %c0_194 = arith.constant 0 : index
    %200 = vector.load %arg5[%c7_192, %c0_193, %c0_194] : memref<8x4x128xf32, #tpu.memory_space<vmem>>, vector<1x1x128xf32>
    %201 = vector.shape_cast %200 : vector<1x1x128xf32> to vector<1x128xf32>
    %202 = vector.shape_cast %199 : vector<1x128xf32> to vector<1x1x128xf32>
    tpu.vector_store %arg5[%c7_192, %c0_193, %c0_194], %202 {strides = array<i32>} : memref<8x4x128xf32, #tpu.memory_space<vmem>>, vector<1x1x128xf32>,
    %c1_195 = arith.constant 1 : index
    %c7_196 = arith.constant 7 : index
    %203 = memref.load %arg0[%c1_195, %c7_196] : memref<4x8xi32, #tpu.memory_space<smem>>
    %204 = arith.index_cast %203 : i32 to index
    %c0_197 = arith.constant 0 : index
    %c0_198 = arith.constant 0 : index
    %205 = vector.load %arg1[%204, %c0_197, %c0_198] : memref<50x1x128xf32, #tpu.memory_space<vmem>>, vector<1x1x128xf32>
    %206 = vector.shape_cast %205 : vector<1x1x128xf32> to vector<1x128xf32>
    %c7_199 = arith.constant 7 : index
    %c1_200 = arith.constant 1 : index
    %c0_201 = arith.constant 0 : index
    %207 = vector.load %arg5[%c7_199, %c1_200, %c0_201] : memref<8x4x128xf32, #tpu.memory_space<vmem>>, vector<1x1x128xf32>
    %208 = vector.shape_cast %207 : vector<1x1x128xf32> to vector<1x128xf32>
    %209 = vector.shape_cast %206 : vector<1x128xf32> to vector<1x1x128xf32>
    tpu.vector_store %arg5[%c7_199, %c1_200, %c0_201], %209 {strides = array<i32>} : memref<8x4x128xf32, #tpu.memory_space<vmem>>, vector<1x1x128xf32>,
    %c2_202 = arith.constant 2 : index
    %c7_203 = arith.constant 7 : index
    %210 = memref.load %arg0[%c2_202, %c7_203] : memref<4x8xi32, #tpu.memory_space<smem>>
    %211 = arith.index_cast %210 : i32 to index
    %c0_204 = arith.constant 0 : index
    %c0_205 = arith.constant 0 : index
    %212 = vector.load %arg1[%211, %c0_204, %c0_205] : memref<50x1x128xf32, #tpu.memory_space<vmem>>, vector<1x1x128xf32>
    %213 = vector.shape_cast %212 : vector<1x1x128xf32> to vector<1x128xf32>
    %c7_206 = arith.constant 7 : index
    %c2_207 = arith.constant 2 : index
    %c0_208 = arith.constant 0 : index
    %214 = vector.load %arg5[%c7_206, %c2_207, %c0_208] : memref<8x4x128xf32, #tpu.memory_space<vmem>>, vector<1x1x128xf32>
    %215 = vector.shape_cast %214 : vector<1x1x128xf32> to vector<1x128xf32>
    %216 = vector.shape_cast %213 : vector<1x128xf32> to vector<1x1x128xf32>
    tpu.vector_store %arg5[%c7_206, %c2_207, %c0_208], %216 {strides = array<i32>} : memref<8x4x128xf32, #tpu.memory_space<vmem>>, vector<1x1x128xf32>,
    %c3_209 = arith.constant 3 : index
    %c7_210 = arith.constant 7 : index
    %217 = memref.load %arg0[%c3_209, %c7_210] : memref<4x8xi32, #tpu.memory_space<smem>>
    %218 = arith.index_cast %217 : i32 to index
    %c0_211 = arith.constant 0 : index
    %c0_212 = arith.constant 0 : index
    %219 = vector.load %arg1[%218, %c0_211, %c0_212] : memref<50x1x128xf32, #tpu.memory_space<vmem>>, vector<1x1x128xf32>
    %220 = vector.shape_cast %219 : vector<1x1x128xf32> to vector<1x128xf32>
    %c7_213 = arith.constant 7 : index
    %c3_214 = arith.constant 3 : index
    %c0_215 = arith.constant 0 : index
    %221 = vector.load %arg5[%c7_213, %c3_214, %c0_215] : memref<8x4x128xf32, #tpu.memory_space<vmem>>, vector<1x1x128xf32>
    %222 = vector.shape_cast %221 : vector<1x1x128xf32> to vector<1x128xf32>
    %223 = vector.shape_cast %220 : vector<1x128xf32> to vector<1x1x128xf32>
    tpu.vector_store %arg5[%c7_213, %c3_214, %c0_215], %223 {strides = array<i32>} : memref<8x4x128xf32, #tpu.memory_space<vmem>>, vector<1x1x128xf32>,
    %c0_216 = arith.constant 0 : index
    %c0_217 = arith.constant 0 : index
    %224 = vector.load %arg3[%c0_216, %c0_217] : memref<40x128xf32, #tpu.memory_space<vmem>>, vector<32x128xf32>
    %c32 = arith.constant 32 : index
    %c0_218 = arith.constant 0 : index
    %225 = vector.load %arg3[%c32, %c0_218] : memref<40x128xf32, #tpu.memory_space<vmem>>, vector<1x32xf32>
    %c33 = arith.constant 33 : index
    %c0_219 = arith.constant 0 : index
    %226 = vector.load %arg3[%c33, %c0_219] : memref<40x128xf32, #tpu.memory_space<vmem>>, vector<1x32xf32>
    %c34 = arith.constant 34 : index
    %c0_220 = arith.constant 0 : index
    %227 = vector.load %arg3[%c34, %c0_220] : memref<40x128xf32, #tpu.memory_space<vmem>>, vector<1x1xf32>
    %c0_221 = arith.constant 0 : index
    %c0_222 = arith.constant 0 : index
    %228 = vector.load %arg2[%c0_221, %c0_222] : memref<4x32xf32, #tpu.memory_space<vmem>>, vector<4x32xf32>
    %c0_i32 = arith.constant 0 : i32
    %229 = arith.index_cast %c0_i32 : i32 to index
    %c0_223 = arith.constant 0 : index
    %c0_224 = arith.constant 0 : index
    %230 = vector.load %arg5[%229, %c0_223, %c0_224] : memref<8x4x128xf32, #tpu.memory_space<vmem>>, vector<1x4x128xf32>
    %231 = vector.shape_cast %230 : vector<1x4x128xf32> to vector<4x128xf32>
    %cst = arith.constant dense<0.000000e+00> : vector<4x128xf32>
    %232 = tpu.matmul %228, %224, %cst {dimension_numbers = #tpu.dot_dimension_numbers<[1], [0], [0], [1], [0, 0, 1, 1], [], []>} : vector<4x32xf32>, vector<32x128xf32>, vector<4x128xf32> -> vector<4x128xf32>
    %233 = vector.extract_strided_slice %231 {offsets = [0, 0], sizes = [4, 64], strides = [1, 1]} : vector<4x128xf32> to vector<4x64xf32>
    %234 = vector.extract_strided_slice %232 {offsets = [0, 0], sizes = [4, 64], strides = [1, 1]} : vector<4x128xf32> to vector<4x64xf32>
    %235 = arith.addf %233, %234 : vector<4x64xf32>
    %236 = arith.negf %235 : vector<4x64xf32>
    %237 = math.exp %236 : vector<4x64xf32>
    %cst_225 = arith.constant 1.000000e+00 : f32
    %238 = vector.broadcast %cst_225 : f32 to vector<4x64xf32>
    %239 = arith.addf %238, %237 : vector<4x64xf32>
    %240 = arith.divf %238, %239 : vector<4x64xf32>
    %241 = vector.extract_strided_slice %240 {offsets = [0, 0], sizes = [4, 32], strides = [1, 1]} : vector<4x64xf32> to vector<4x32xf32>
    %242 = vector.extract_strided_slice %240 {offsets = [0, 32], sizes = [4, 32], strides = [1, 1]} : vector<4x64xf32> to vector<4x32xf32>
    %243 = vector.extract_strided_slice %231 {offsets = [0, 64], sizes = [4, 32], strides = [1, 1]} : vector<4x128xf32> to vector<4x32xf32>
    %244 = vector.extract_strided_slice %232 {offsets = [0, 64], sizes = [4, 32], strides = [1, 1]} : vector<4x128xf32> to vector<4x32xf32>
    %245 = vector.broadcast %225 : vector<1x32xf32> to vector<4x32xf32>
    %246 = arith.addf %244, %245 : vector<4x32xf32>
    %247 = arith.mulf %241, %246 : vector<4x32xf32>
    %248 = arith.addf %243, %247 : vector<4x32xf32>
    %249 = math.tanh %248 : vector<4x32xf32>
    %cst_226 = arith.constant 1.000000e+00 : f32
    %250 = vector.broadcast %cst_226 : f32 to vector<4x32xf32>
    %251 = arith.subf %250, %242 : vector<4x32xf32>
    %252 = arith.mulf %251, %249 : vector<4x32xf32>
    %253 = arith.mulf %242, %228 : vector<4x32xf32>
    %254 = arith.addf %252, %253 : vector<4x32xf32>
    %c1_i32 = arith.constant 1 : i32
    %255 = arith.index_cast %c1_i32 : i32 to index
    %c0_227 = arith.constant 0 : index
    %c0_228 = arith.constant 0 : index
    %256 = vector.load %arg5[%255, %c0_227, %c0_228] : memref<8x4x128xf32, #tpu.memory_space<vmem>>, vector<1x4x128xf32>
    %257 = vector.shape_cast %256 : vector<1x4x128xf32> to vector<4x128xf32>
    %cst_229 = arith.constant dense<0.000000e+00> : vector<4x128xf32>
    %258 = tpu.matmul %254, %224, %cst_229 {dimension_numbers = #tpu.dot_dimension_numbers<[1], [0], [0], [1], [0, 0, 1, 1], [], []>} : vector<4x32xf32>, vector<32x128xf32>, vector<4x128xf32> -> vector<4x128xf32>
    %259 = vector.extract_strided_slice %257 {offsets = [0, 0], sizes = [4, 64], strides = [1, 1]} : vector<4x128xf32> to vector<4x64xf32>
    %260 = vector.extract_strided_slice %258 {offsets = [0, 0], sizes = [4, 64], strides = [1, 1]} : vector<4x128xf32> to vector<4x64xf32>
    %261 = arith.addf %259, %260 : vector<4x64xf32>
    %262 = arith.negf %261 : vector<4x64xf32>
    %263 = math.exp %262 : vector<4x64xf32>
    %cst_230 = arith.constant 1.000000e+00 : f32
    %264 = vector.broadcast %cst_230 : f32 to vector<4x64xf32>
    %265 = arith.addf %264, %263 : vector<4x64xf32>
    %266 = arith.divf %264, %265 : vector<4x64xf32>
    %267 = vector.extract_strided_slice %266 {offsets = [0, 0], sizes = [4, 32], strides = [1, 1]} : vector<4x64xf32> to vector<4x32xf32>
    %268 = vector.extract_strided_slice %266 {offsets = [0, 32], sizes = [4, 32], strides = [1, 1]} : vector<4x64xf32> to vector<4x32xf32>
    %269 = vector.extract_strided_slice %257 {offsets = [0, 64], sizes = [4, 32], strides = [1, 1]} : vector<4x128xf32> to vector<4x32xf32>
    %270 = vector.extract_strided_slice %258 {offsets = [0, 64], sizes = [4, 32], strides = [1, 1]} : vector<4x128xf32> to vector<4x32xf32>
    %271 = vector.broadcast %225 : vector<1x32xf32> to vector<4x32xf32>
    %272 = arith.addf %270, %271 : vector<4x32xf32>
    %273 = arith.mulf %267, %272 : vector<4x32xf32>
    %274 = arith.addf %269, %273 : vector<4x32xf32>
    %275 = math.tanh %274 : vector<4x32xf32>
    %cst_231 = arith.constant 1.000000e+00 : f32
    %276 = vector.broadcast %cst_231 : f32 to vector<4x32xf32>
    %277 = arith.subf %276, %268 : vector<4x32xf32>
    %278 = arith.mulf %277, %275 : vector<4x32xf32>
    %279 = arith.mulf %268, %254 : vector<4x32xf32>
    %280 = arith.addf %278, %279 : vector<4x32xf32>
    %c2_i32 = arith.constant 2 : i32
    %281 = arith.index_cast %c2_i32 : i32 to index
    %c0_232 = arith.constant 0 : index
    %c0_233 = arith.constant 0 : index
    %282 = vector.load %arg5[%281, %c0_232, %c0_233] : memref<8x4x128xf32, #tpu.memory_space<vmem>>, vector<1x4x128xf32>
    %283 = vector.shape_cast %282 : vector<1x4x128xf32> to vector<4x128xf32>
    %cst_234 = arith.constant dense<0.000000e+00> : vector<4x128xf32>
    %284 = tpu.matmul %280, %224, %cst_234 {dimension_numbers = #tpu.dot_dimension_numbers<[1], [0], [0], [1], [0, 0, 1, 1], [], []>} : vector<4x32xf32>, vector<32x128xf32>, vector<4x128xf32> -> vector<4x128xf32>
    %285 = vector.extract_strided_slice %283 {offsets = [0, 0], sizes = [4, 64], strides = [1, 1]} : vector<4x128xf32> to vector<4x64xf32>
    %286 = vector.extract_strided_slice %284 {offsets = [0, 0], sizes = [4, 64], strides = [1, 1]} : vector<4x128xf32> to vector<4x64xf32>
    %287 = arith.addf %285, %286 : vector<4x64xf32>
    %288 = arith.negf %287 : vector<4x64xf32>
    %289 = math.exp %288 : vector<4x64xf32>
    %cst_235 = arith.constant 1.000000e+00 : f32
    %290 = vector.broadcast %cst_235 : f32 to vector<4x64xf32>
    %291 = arith.addf %290, %289 : vector<4x64xf32>
    %292 = arith.divf %290, %291 : vector<4x64xf32>
    %293 = vector.extract_strided_slice %292 {offsets = [0, 0], sizes = [4, 32], strides = [1, 1]} : vector<4x64xf32> to vector<4x32xf32>
    %294 = vector.extract_strided_slice %292 {offsets = [0, 32], sizes = [4, 32], strides = [1, 1]} : vector<4x64xf32> to vector<4x32xf32>
    %295 = vector.extract_strided_slice %283 {offsets = [0, 64], sizes = [4, 32], strides = [1, 1]} : vector<4x128xf32> to vector<4x32xf32>
    %296 = vector.extract_strided_slice %284 {offsets = [0, 64], sizes = [4, 32], strides = [1, 1]} : vector<4x128xf32> to vector<4x32xf32>
    %297 = vector.broadcast %225 : vector<1x32xf32> to vector<4x32xf32>
    %298 = arith.addf %296, %297 : vector<4x32xf32>
    %299 = arith.mulf %293, %298 : vector<4x32xf32>
    %300 = arith.addf %295, %299 : vector<4x32xf32>
    %301 = math.tanh %300 : vector<4x32xf32>
    %cst_236 = arith.constant 1.000000e+00 : f32
    %302 = vector.broadcast %cst_236 : f32 to vector<4x32xf32>
    %303 = arith.subf %302, %294 : vector<4x32xf32>
    %304 = arith.mulf %303, %301 : vector<4x32xf32>
    %305 = arith.mulf %294, %280 : vector<4x32xf32>
    %306 = arith.addf %304, %305 : vector<4x32xf32>
    %c3_i32 = arith.constant 3 : i32
    %307 = arith.index_cast %c3_i32 : i32 to index
    %c0_237 = arith.constant 0 : index
    %c0_238 = arith.constant 0 : index
    %308 = vector.load %arg5[%307, %c0_237, %c0_238] : memref<8x4x128xf32, #tpu.memory_space<vmem>>, vector<1x4x128xf32>
    %309 = vector.shape_cast %308 : vector<1x4x128xf32> to vector<4x128xf32>
    %cst_239 = arith.constant dense<0.000000e+00> : vector<4x128xf32>
    %310 = tpu.matmul %306, %224, %cst_239 {dimension_numbers = #tpu.dot_dimension_numbers<[1], [0], [0], [1], [0, 0, 1, 1], [], []>} : vector<4x32xf32>, vector<32x128xf32>, vector<4x128xf32> -> vector<4x128xf32>
    %311 = vector.extract_strided_slice %309 {offsets = [0, 0], sizes = [4, 64], strides = [1, 1]} : vector<4x128xf32> to vector<4x64xf32>
    %312 = vector.extract_strided_slice %310 {offsets = [0, 0], sizes = [4, 64], strides = [1, 1]} : vector<4x128xf32> to vector<4x64xf32>
    %313 = arith.addf %311, %312 : vector<4x64xf32>
    %314 = arith.negf %313 : vector<4x64xf32>
    %315 = math.exp %314 : vector<4x64xf32>
    %cst_240 = arith.constant 1.000000e+00 : f32
    %316 = vector.broadcast %cst_240 : f32 to vector<4x64xf32>
    %317 = arith.addf %316, %315 : vector<4x64xf32>
    %318 = arith.divf %316, %317 : vector<4x64xf32>
    %319 = vector.extract_strided_slice %318 {offsets = [0, 0], sizes = [4, 32], strides = [1, 1]} : vector<4x64xf32> to vector<4x32xf32>
    %320 = vector.extract_strided_slice %318 {offsets = [0, 32], sizes = [4, 32], strides = [1, 1]} : vector<4x64xf32> to vector<4x32xf32>
    %321 = vector.extract_strided_slice %309 {offsets = [0, 64], sizes = [4, 32], strides = [1, 1]} : vector<4x128xf32> to vector<4x32xf32>
    %322 = vector.extract_strided_slice %310 {offsets = [0, 64], sizes = [4, 32], strides = [1, 1]} : vector<4x128xf32> to vector<4x32xf32>
    %323 = vector.broadcast %225 : vector<1x32xf32> to vector<4x32xf32>
    %324 = arith.addf %322, %323 : vector<4x32xf32>
    %325 = arith.mulf %319, %324 : vector<4x32xf32>
    %326 = arith.addf %321, %325 : vector<4x32xf32>
    %327 = math.tanh %326 : vector<4x32xf32>
    %cst_241 = arith.constant 1.000000e+00 : f32
    %328 = vector.broadcast %cst_241 : f32 to vector<4x32xf32>
    %329 = arith.subf %328, %320 : vector<4x32xf32>
    %330 = arith.mulf %329, %327 : vector<4x32xf32>
    %331 = arith.mulf %320, %306 : vector<4x32xf32>
    %332 = arith.addf %330, %331 : vector<4x32xf32>
    %c4_i32 = arith.constant 4 : i32
    %333 = arith.index_cast %c4_i32 : i32 to index
    %c0_242 = arith.constant 0 : index
    %c0_243 = arith.constant 0 : index
    %334 = vector.load %arg5[%333, %c0_242, %c0_243] : memref<8x4x128xf32, #tpu.memory_space<vmem>>, vector<1x4x128xf32>
    %335 = vector.shape_cast %334 : vector<1x4x128xf32> to vector<4x128xf32>
    %cst_244 = arith.constant dense<0.000000e+00> : vector<4x128xf32>
    %336 = tpu.matmul %332, %224, %cst_244 {dimension_numbers = #tpu.dot_dimension_numbers<[1], [0], [0], [1], [0, 0, 1, 1], [], []>} : vector<4x32xf32>, vector<32x128xf32>, vector<4x128xf32> -> vector<4x128xf32>
    %337 = vector.extract_strided_slice %335 {offsets = [0, 0], sizes = [4, 64], strides = [1, 1]} : vector<4x128xf32> to vector<4x64xf32>
    %338 = vector.extract_strided_slice %336 {offsets = [0, 0], sizes = [4, 64], strides = [1, 1]} : vector<4x128xf32> to vector<4x64xf32>
    %339 = arith.addf %337, %338 : vector<4x64xf32>
    %340 = arith.negf %339 : vector<4x64xf32>
    %341 = math.exp %340 : vector<4x64xf32>
    %cst_245 = arith.constant 1.000000e+00 : f32
    %342 = vector.broadcast %cst_245 : f32 to vector<4x64xf32>
    %343 = arith.addf %342, %341 : vector<4x64xf32>
    %344 = arith.divf %342, %343 : vector<4x64xf32>
    %345 = vector.extract_strided_slice %344 {offsets = [0, 0], sizes = [4, 32], strides = [1, 1]} : vector<4x64xf32> to vector<4x32xf32>
    %346 = vector.extract_strided_slice %344 {offsets = [0, 32], sizes = [4, 32], strides = [1, 1]} : vector<4x64xf32> to vector<4x32xf32>
    %347 = vector.extract_strided_slice %335 {offsets = [0, 64], sizes = [4, 32], strides = [1, 1]} : vector<4x128xf32> to vector<4x32xf32>
    %348 = vector.extract_strided_slice %336 {offsets = [0, 64], sizes = [4, 32], strides = [1, 1]} : vector<4x128xf32> to vector<4x32xf32>
    %349 = vector.broadcast %225 : vector<1x32xf32> to vector<4x32xf32>
    %350 = arith.addf %348, %349 : vector<4x32xf32>
    %351 = arith.mulf %345, %350 : vector<4x32xf32>
    %352 = arith.addf %347, %351 : vector<4x32xf32>
    %353 = math.tanh %352 : vector<4x32xf32>
    %cst_246 = arith.constant 1.000000e+00 : f32
    %354 = vector.broadcast %cst_246 : f32 to vector<4x32xf32>
    %355 = arith.subf %354, %346 : vector<4x32xf32>
    %356 = arith.mulf %355, %353 : vector<4x32xf32>
    %357 = arith.mulf %346, %332 : vector<4x32xf32>
    %358 = arith.addf %356, %357 : vector<4x32xf32>
    %c5_i32 = arith.constant 5 : i32
    %359 = arith.index_cast %c5_i32 : i32 to index
    %c0_247 = arith.constant 0 : index
    %c0_248 = arith.constant 0 : index
    %360 = vector.load %arg5[%359, %c0_247, %c0_248] : memref<8x4x128xf32, #tpu.memory_space<vmem>>, vector<1x4x128xf32>
    %361 = vector.shape_cast %360 : vector<1x4x128xf32> to vector<4x128xf32>
    %cst_249 = arith.constant dense<0.000000e+00> : vector<4x128xf32>
    %362 = tpu.matmul %358, %224, %cst_249 {dimension_numbers = #tpu.dot_dimension_numbers<[1], [0], [0], [1], [0, 0, 1, 1], [], []>} : vector<4x32xf32>, vector<32x128xf32>, vector<4x128xf32> -> vector<4x128xf32>
    %363 = vector.extract_strided_slice %361 {offsets = [0, 0], sizes = [4, 64], strides = [1, 1]} : vector<4x128xf32> to vector<4x64xf32>
    %364 = vector.extract_strided_slice %362 {offsets = [0, 0], sizes = [4, 64], strides = [1, 1]} : vector<4x128xf32> to vector<4x64xf32>
    %365 = arith.addf %363, %364 : vector<4x64xf32>
    %366 = arith.negf %365 : vector<4x64xf32>
    %367 = math.exp %366 : vector<4x64xf32>
    %cst_250 = arith.constant 1.000000e+00 : f32
    %368 = vector.broadcast %cst_250 : f32 to vector<4x64xf32>
    %369 = arith.addf %368, %367 : vector<4x64xf32>
    %370 = arith.divf %368, %369 : vector<4x64xf32>
    %371 = vector.extract_strided_slice %370 {offsets = [0, 0], sizes = [4, 32], strides = [1, 1]} : vector<4x64xf32> to vector<4x32xf32>
    %372 = vector.extract_strided_slice %370 {offsets = [0, 32], sizes = [4, 32], strides = [1, 1]} : vector<4x64xf32> to vector<4x32xf32>
    %373 = vector.extract_strided_slice %361 {offsets = [0, 64], sizes = [4, 32], strides = [1, 1]} : vector<4x128xf32> to vector<4x32xf32>
    %374 = vector.extract_strided_slice %362 {offsets = [0, 64], sizes = [4, 32], strides = [1, 1]} : vector<4x128xf32> to vector<4x32xf32>
    %375 = vector.broadcast %225 : vector<1x32xf32> to vector<4x32xf32>
    %376 = arith.addf %374, %375 : vector<4x32xf32>
    %377 = arith.mulf %371, %376 : vector<4x32xf32>
    %378 = arith.addf %373, %377 : vector<4x32xf32>
    %379 = math.tanh %378 : vector<4x32xf32>
    %cst_251 = arith.constant 1.000000e+00 : f32
    %380 = vector.broadcast %cst_251 : f32 to vector<4x32xf32>
    %381 = arith.subf %380, %372 : vector<4x32xf32>
    %382 = arith.mulf %381, %379 : vector<4x32xf32>
    %383 = arith.mulf %372, %358 : vector<4x32xf32>
    %384 = arith.addf %382, %383 : vector<4x32xf32>
    %c6_i32 = arith.constant 6 : i32
    %385 = arith.index_cast %c6_i32 : i32 to index
    %c0_252 = arith.constant 0 : index
    %c0_253 = arith.constant 0 : index
    %386 = vector.load %arg5[%385, %c0_252, %c0_253] : memref<8x4x128xf32, #tpu.memory_space<vmem>>, vector<1x4x128xf32>
    %387 = vector.shape_cast %386 : vector<1x4x128xf32> to vector<4x128xf32>
    %cst_254 = arith.constant dense<0.000000e+00> : vector<4x128xf32>
    %388 = tpu.matmul %384, %224, %cst_254 {dimension_numbers = #tpu.dot_dimension_numbers<[1], [0], [0], [1], [0, 0, 1, 1], [], []>} : vector<4x32xf32>, vector<32x128xf32>, vector<4x128xf32> -> vector<4x128xf32>
    %389 = vector.extract_strided_slice %387 {offsets = [0, 0], sizes = [4, 64], strides = [1, 1]} : vector<4x128xf32> to vector<4x64xf32>
    %390 = vector.extract_strided_slice %388 {offsets = [0, 0], sizes = [4, 64], strides = [1, 1]} : vector<4x128xf32> to vector<4x64xf32>
    %391 = arith.addf %389, %390 : vector<4x64xf32>
    %392 = arith.negf %391 : vector<4x64xf32>
    %393 = math.exp %392 : vector<4x64xf32>
    %cst_255 = arith.constant 1.000000e+00 : f32
    %394 = vector.broadcast %cst_255 : f32 to vector<4x64xf32>
    %395 = arith.addf %394, %393 : vector<4x64xf32>
    %396 = arith.divf %394, %395 : vector<4x64xf32>
    %397 = vector.extract_strided_slice %396 {offsets = [0, 0], sizes = [4, 32], strides = [1, 1]} : vector<4x64xf32> to vector<4x32xf32>
    %398 = vector.extract_strided_slice %396 {offsets = [0, 32], sizes = [4, 32], strides = [1, 1]} : vector<4x64xf32> to vector<4x32xf32>
    %399 = vector.extract_strided_slice %387 {offsets = [0, 64], sizes = [4, 32], strides = [1, 1]} : vector<4x128xf32> to vector<4x32xf32>
    %400 = vector.extract_strided_slice %388 {offsets = [0, 64], sizes = [4, 32], strides = [1, 1]} : vector<4x128xf32> to vector<4x32xf32>
    %401 = vector.broadcast %225 : vector<1x32xf32> to vector<4x32xf32>
    %402 = arith.addf %400, %401 : vector<4x32xf32>
    %403 = arith.mulf %397, %402 : vector<4x32xf32>
    %404 = arith.addf %399, %403 : vector<4x32xf32>
    %405 = math.tanh %404 : vector<4x32xf32>
    %cst_256 = arith.constant 1.000000e+00 : f32
    %406 = vector.broadcast %cst_256 : f32 to vector<4x32xf32>
    %407 = arith.subf %406, %398 : vector<4x32xf32>
    %408 = arith.mulf %407, %405 : vector<4x32xf32>
    %409 = arith.mulf %398, %384 : vector<4x32xf32>
    %410 = arith.addf %408, %409 : vector<4x32xf32>
    %c7_i32 = arith.constant 7 : i32
    %411 = arith.index_cast %c7_i32 : i32 to index
    %c0_257 = arith.constant 0 : index
    %c0_258 = arith.constant 0 : index
    %412 = vector.load %arg5[%411, %c0_257, %c0_258] : memref<8x4x128xf32, #tpu.memory_space<vmem>>, vector<1x4x128xf32>
    %413 = vector.shape_cast %412 : vector<1x4x128xf32> to vector<4x128xf32>
    %cst_259 = arith.constant dense<0.000000e+00> : vector<4x128xf32>
    %414 = tpu.matmul %410, %224, %cst_259 {dimension_numbers = #tpu.dot_dimension_numbers<[1], [0], [0], [1], [0, 0, 1, 1], [], []>} : vector<4x32xf32>, vector<32x128xf32>, vector<4x128xf32> -> vector<4x128xf32>
    %415 = vector.extract_strided_slice %413 {offsets = [0, 0], sizes = [4, 64], strides = [1, 1]} : vector<4x128xf32> to vector<4x64xf32>
    %416 = vector.extract_strided_slice %414 {offsets = [0, 0], sizes = [4, 64], strides = [1, 1]} : vector<4x128xf32> to vector<4x64xf32>
    %417 = arith.addf %415, %416 : vector<4x64xf32>
    %418 = arith.negf %417 : vector<4x64xf32>
    %419 = math.exp %418 : vector<4x64xf32>
    %cst_260 = arith.constant 1.000000e+00 : f32
    %420 = vector.broadcast %cst_260 : f32 to vector<4x64xf32>
    %421 = arith.addf %420, %419 : vector<4x64xf32>
    %422 = arith.divf %420, %421 : vector<4x64xf32>
    %423 = vector.extract_strided_slice %422 {offsets = [0, 0], sizes = [4, 32], strides = [1, 1]} : vector<4x64xf32> to vector<4x32xf32>
    %424 = vector.extract_strided_slice %422 {offsets = [0, 32], sizes = [4, 32], strides = [1, 1]} : vector<4x64xf32> to vector<4x32xf32>
    %425 = vector.extract_strided_slice %413 {offsets = [0, 64], sizes = [4, 32], strides = [1, 1]} : vector<4x128xf32> to vector<4x32xf32>
    %426 = vector.extract_strided_slice %414 {offsets = [0, 64], sizes = [4, 32], strides = [1, 1]} : vector<4x128xf32> to vector<4x32xf32>
    %427 = vector.broadcast %225 : vector<1x32xf32> to vector<4x32xf32>
    %428 = arith.addf %426, %427 : vector<4x32xf32>
    %429 = arith.mulf %423, %428 : vector<4x32xf32>
    %430 = arith.addf %425, %429 : vector<4x32xf32>
    %431 = math.tanh %430 : vector<4x32xf32>
    %cst_261 = arith.constant 1.000000e+00 : f32
    %432 = vector.broadcast %cst_261 : f32 to vector<4x32xf32>
    %433 = arith.subf %432, %424 : vector<4x32xf32>
    %434 = arith.mulf %433, %431 : vector<4x32xf32>
    %435 = arith.mulf %424, %410 : vector<4x32xf32>
    %436 = arith.addf %434, %435 : vector<4x32xf32>
    %c8_i32 = arith.constant 8 : i32
    %437 = vector.broadcast %226 : vector<1x32xf32> to vector<4x32xf32>
    %438 = arith.mulf %436, %437 : vector<4x32xf32>
    %cst_262 = arith.constant dense<0.000000e+00> : vector<4xf32>
    %439 = vector.multi_reduction <add>, %438, %cst_262 [1] : vector<4x32xf32> to vector<4xf32>
    %440 = vector.shape_cast %439 : vector<4xf32> to vector<4x1xf32>
    %441 = vector.broadcast %227 : vector<1x1xf32> to vector<4x1xf32>
    %442 = arith.addf %440, %441 : vector<4x1xf32>
    %443 = arith.negf %442 : vector<4x1xf32>
    %444 = math.exp %443 : vector<4x1xf32>
    %cst_263 = arith.constant 1.000000e+00 : f32
    %445 = vector.broadcast %cst_263 : f32 to vector<4x1xf32>
    %446 = arith.addf %445, %444 : vector<4x1xf32>
    %447 = arith.divf %445, %446 : vector<4x1xf32>
    %c0_264 = arith.constant 0 : index
    %c0_265 = arith.constant 0 : index
    %448 = vector.load %arg4[%c0_264, %c0_265] : memref<4x128xf32, #tpu.memory_space<vmem>>, vector<4x32xf32>
    tpu.vector_store %arg4[%c0_264, %c0_265], %436 {strides = array<i32>} : memref<4x128xf32, #tpu.memory_space<vmem>>, vector<4x32xf32>,
    %449 = vector.shape_cast %447 : vector<4x1xf32> to vector<4x1xf32>
    %450 = vector.broadcast %449 : vector<4x1xf32> to vector<4x96xf32>
    %c0_266 = arith.constant 0 : index
    %c32_267 = arith.constant 32 : index
    %451 = vector.load %arg4[%c0_266, %c32_267] : memref<4x128xf32, #tpu.memory_space<vmem>>, vector<4x96xf32>
    tpu.vector_store %arg4[%c0_266, %c32_267], %450 {strides = array<i32>} : memref<4x128xf32, #tpu.memory_space<vmem>>, vector<4x96xf32>,
    return
  }
}

</mosaic_0001>

<bundles_post_ra>
// kernel: rnn_model_forward.1
= control target key start
LH: loop header
LB: loop body
LE: loop exit
PB: predicated region body
PF: predicated region fallthrough
CT: control target
= control target key end

     0   :  { %9 = vsyncpa [#allocation5], 0  ;;  %s1644_s0 = inlined_call_operand.hbm [shape: s32[4,8], index: 0, kind: input, shape index: {}]   ;;  %s1645_s1 = inlined_call_operand.hbm [shape: f32[50,1,128], index: 1, kind: input, shape index: {}]   ;;  %s1646_s2 = inlined_call_operand.hbm [shape: f32[4,32], index: 2, kind: input, shape index: {}]   ;;  %s1647_s3 = inlined_call_operand.hbm [shape: f32[40,128], index: 3, kind: input, shape index: {}]   ;;  %s1648_s4 = inlined_call_operand.vmem [shape: f32[4,128], index: 4, kind: output, shape index: {}]  }
   0x1   :  { %10 = vsyncpa [#allocation4], 0 }
   0x2   :  { %11 = vsyncpa [#allocation8], 0  ;;  %s1443_s15 = smov [#allocation7]   ;;  %s1444_s17 = smov [#allocation6]  }
   0x3   :  { %s38_s16 = sshll.u32 %s1443_s15, 4  ;;  %s25_s18 = sshll.u32 %s1444_s17, 4  ;;  %s39_s16 = int_to_ptr.vmem [resolvable:$true] %s38_s16  ;;  %s26_s18 = int_to_ptr.vmem [resolvable:$true] %s25_s18 }
   0x4   :  { %s1377_s19 = scalar_lea.vmem %s39_s16, 64  ;;  %p1382_p1 = scmp.lt.s32.totalorder %s39_s16, %s39_s16 }
   0x5   :  { %p1378_p0 = scmp.ne.s32.totalorder %s39_s16, %s1377_s19  ;;  %p1383_p2 = scmp.lt.s32.totalorder %s1377_s19, %s1377_s19 }
   0x7   :  { %p1384_p3 = por %p1383_p2, %p1382_p1 }
   0x9   :  { %p1385_p4 = pnand %p1384_p3, %p1378_p0 }
   0xb   :  { %1388 = shalt.err (!%p1385_p4)
}
   0xc   :  { %41 = dma.hbm_to_vmem [thread:$0]  %s1646_s2, 64, %s39_s16, [#allocation8]  }
   0xd   :  { %s1445_s22 = smov [#allocation3]   ;;  %s1405_s25 = scalar_lea.vmem %s26_s18, 800 }
   0xe   :  { %19 = dma.hbm_to_smem %s1644_s0, 64, %s1445_s22, [#allocation5]  }
   0xf   :  { %p1406_p5 = scmp.ne.s32.totalorder %s26_s18, %s1405_s25  ;;  %p1410_p6 = scmp.lt.s32.totalorder %s26_s18, %s26_s18 }
  0x10   :  { %p1411_p7 = scmp.lt.s32.totalorder %s1405_s25, %s1405_s25 }
  0x12   :  { %p1412_p8 = por %p1411_p7, %p1410_p6 }
  0x14   :  { %p1413_p9 = pnand %p1412_p8, %p1406_p5 }
  0x16   :  { %1416 = shalt.err (!%p1413_p9)
}
  0x17   :  { %s1446_s26 = smov 16   ;;  %s1447_s27 = smov 1  }
  0x18   :  { %31 = dma.hbm_to_vmem [thread:$0]  %s1645_s1, 800, %s26_s18, [#allocation4], %s1446_s26, %s1446_s26, %s1447_s27  }
  0x19   :  { %s1448_s2 = smov [#allocation9]  }
  0x1a   :  { %s47_s30 = sshll.u32 %s1448_s2, 4  ;;  %s48_s30 = int_to_ptr.vmem [resolvable:$true] %s47_s30 }
  0x1b   :  { %s1425_s5 = scalar_lea.vmem %s48_s30, 640  ;;  %p1430_p11 = scmp.lt.s32.totalorder %s48_s30, %s48_s30 }
  0x1c   :  { %p1426_p10 = scmp.ne.s32.totalorder %s48_s30, %s1425_s5  ;;  %p1431_p12 = scmp.lt.s32.totalorder %s1425_s5, %s1425_s5 }
  0x1e   :  { %p1432_p13 = por %p1431_p12, %p1430_p11 }
  0x20   :  { %p1433_p0 = pnand %p1432_p13, %p1426_p10 }
  0x22   :  { %1436 = shalt.err (!%p1433_p0)
}
  0x23   :  { %s1449_s0 = smov 128   ;;  %s1450_s6 = smov 8  }
  0x24   :  { %53 = dma.hbm_to_vmem [thread:$0]  %s1647_s3, 640, %s48_s30, [#allocation8], %s1449_s0, %s1449_s0, %s1450_s6  }
  0x25   :  { %1437 = dma.done.wait [#allocation5], 64  }
  0x26   :  { %1438 = vsyncadd [#allocation5], 4294967232 }
  0x27   :  { %1439 = dma.done.wait [#allocation4], 800  }
  0x28   :  { %1440 = vsyncadd [#allocation4], 4294966496 }
  0x29   :  { %1441 = dma.done.wait [#allocation8], 704  }
  0x2a   :  { %1442 = vsyncadd [#allocation8], 4294966592 }
  0x2b   :  { %66 = sfence }
  0x2c   :  { %v1494_v0 = vld [vmem:[#allocation9 + $0x18] sm:$0xff]  ;;  %v1451_v1 = vmov 0.0   ;;  %v1497_v2 = vld [vmem:[#allocation9 + $0x10] sm:$0xff]  ;;  %vm1452_vm0 = vmmov 0   ;;  %v1156_v3 = vld [vmem:[#allocation9 + $0x20] ss:$0 sm:$0xff] }
  0x2d   :  { %1214 = vmatprep.subr.mxu0 %v1451_v1  ;;  %1222 = vmatprep.mubr.msk.f32.mxu0 %vm1452_vm0, %v1451_v1  ;;  %s1453_s1 = smov 64   ;;  %s67_s3 = sld [smem:[#allocation3]]  ;;  %v1504_v4 = vld [vmem:[#allocation9 + $0x8] sm:$0xff]  ;;  %v1510_v5 = vld [vmem:[#allocation9] sm:$0xff]  ;;  %v209_v6 = vld [vmem:[#allocation7] sm:$0xf] }
  0x2e   :  { %1215 = vmatpush3.msra.mxu0 %v1494_v0  ;;  %297 = vrot.lane.b32.xlu0 %v1156_v3, %s1453_s1  ;;  %s1123_s9 = sld [smem:[#allocation3 + $0x80]]  ;;  %vm211_vm1 = vcmask 261120   ;;  %s1454_s16 = smov 32   ;;  %vm1057_vm2 = vcmask 257024   ;;  %vm1082_vm3 = vcmask 1043712  }
  0x2f   :  { %1216 = vmatprep.subr.mxu0 %v1451_v1  ;;  %1225 = vmatprep.subr.mxu1 %v1451_v1  ;;  %s1124_s10 = sld [smem:[#allocation3 + $0x100]]  ;;  %s1455_s17 = smov 96  }
  0x30   :  { %1217 = vmatpush3.msra.mxu0 %v1497_v2  ;;  %1226 = vmatpush3.msra.mxu1 %v1494_v0  ;;  %s1125_s11 = sld [smem:[#allocation3 + $0x180]] }
  0x31   :  { %1218 = vmatprep.subr.mxu0 %v1451_v1  ;;  %1227 = vmatprep.subr.mxu1 %v1451_v1  ;;  %s1126_s18 = sld [smem:[#allocation3 + $0x1]] }
  0x32   :  { %1219 = vmatpush3.msra.mxu0 %v1504_v4  ;;  %1228 = vmatpush3.msra.mxu1 %v1497_v2  ;;  %s1127_s19 = sld [smem:[#allocation3 + $0x81]] }
  0x33   :  { %1220 = vmatprep.subr.mxu0 %v1451_v1  ;;  %1229 = vmatprep.subr.mxu1 %v1451_v1  ;;  %s68_s12 = scalar_lea.vmem [#allocation6], %s67_s3  ;;  %s1128_s20 = sld [smem:[#allocation3 + $0x101]] }
  0x34   :  { %1221 = vmatpush3.msra.mxu0 %v1510_v5  ;;  %1230 = vmatpush3.msra.mxu1 %v1504_v4  ;;  %v69_v7 = vld [vmem:[%s68_s12] sm:$0x1]  ;;  %s72_s13 = scalar_lea.vmem [#allocation6], %s1123_s9  ;;  %s1129_s21 = sld [smem:[#allocation3 + $0x181]] }
  0x35   :  { %1223 = vmatmul.mubr.msk.f32.vlgmr.msra.gmra.mxu0 %vm211_vm1, %v209_v6  ;;  %1231 = vmatprep.subr.mxu1 %v1451_v1  ;;  %70 = vst [vmem:[#allocation2] sm:$0x1] %v69_v7  ;;  %v73_v8 = vld [vmem:[%s72_s13] sm:$0x1]  ;;  %s76_s14 = scalar_lea.vmem [#allocation6], %s1124_s10  ;;  %s1130_s26 = sld [smem:[#allocation3 + $0x2]] }
  0x36   :  { %1232 = vmatpush3.msra.mxu1 %v1510_v5  ;;  %1233 = vmatprep.mubr.msk.f32.mxu1 %vm1452_vm0, %v1451_v1  ;;  %74 = vst [vmem:[#allocation2 + $0x1] sm:$0x1] %v73_v8  ;;  %v77_v9 = vld [vmem:[%s76_s14] sm:$0x1]  ;;  %s80_s15 = scalar_lea.vmem [#allocation6], %s1125_s11  ;;  %s1131_s27 = sld [smem:[#allocation3 + $0x82]] }
  0x37   :  { %1236 = vmatprep.subr.mxu0 %v1451_v1  ;;  %1244 = vmatprep.mubr.msk.f32.mxu0 %vm1452_vm0, %v1451_v1  ;;  %78 = vst [vmem:[#allocation2 + $0x2] sm:$0x1] %v77_v9  ;;  %v81_v10 = vld [vmem:[%s80_s15] sm:$0x1]  ;;  %s84_s22 = scalar_lea.vmem [#allocation6], %s1126_s18  ;;  %s1132_s28 = sld [smem:[#allocation3 + $0x102]] }
  0x38   :  { %1237 = vmatpush3.msra.mxu0 %v1494_v0  ;;  %1247 = vmatprep.subr.mxu1 %v1451_v1  ;;  %82 = vst [vmem:[#allocation2 + $0x3] sm:$0x1] %v81_v10  ;;  %v85_v28 = vld [vmem:[%s84_s22] sm:$0x1]  ;;  %s89_s23 = scalar_lea.vmem [#allocation6], %s1127_s19  ;;  %s1133_s29 = sld [smem:[#allocation3 + $0x182]] }
  0x39   :  { %1238 = vmatprep.subr.mxu0 %v1451_v1  ;;  %87 = vst [vmem:[#allocation2 + $0x4] sm:$0x1] %v85_v28  ;;  %v90_v30 = vld [vmem:[%s89_s23] sm:$0x1]  ;;  %s93_s24 = scalar_lea.vmem [#allocation6], %s1128_s20  ;;  %s1134_s6 = sld [smem:[#allocation3 + $0x3]] }
  0x3a   :  { %1239 = vmatpush3.msra.mxu0 %v1497_v2  ;;  %91 = vst [vmem:[#allocation2 + $0x5] sm:$0x1] %v90_v30  ;;  %v94_v33 = vld [vmem:[%s93_s24] sm:$0x1]  ;;  %s97_s25 = scalar_lea.vmem [#allocation6], %s1129_s21  ;;  %s1135_s7 = sld [smem:[#allocation3 + $0x83]] }
  0x3b   :  { %1240 = vmatprep.subr.mxu0 %v1451_v1  ;;  %95 = vst [vmem:[#allocation2 + $0x6] sm:$0x1] %v94_v33  ;;  %v98_v34 = vld [vmem:[%s97_s25] sm:$0x1]  ;;  %s101_s2 = scalar_lea.vmem [#allocation6], %s1130_s26  ;;  %s1136_s8 = sld [smem:[#allocation3 + $0x103]] }
  0x3c   :  { %1241 = vmatpush3.msra.mxu0 %v1504_v4  ;;  %99 = vst [vmem:[#allocation2 + $0x7] sm:$0x1] %v98_v34  ;;  %v102_v52 = vld [vmem:[%s101_s2] sm:$0x1]  ;;  %s106_s30 = scalar_lea.vmem [#allocation6], %s1131_s27  ;;  %s1137_s3 = sld [smem:[#allocation3 + $0x183]] }
  0x3d   :  { %1242 = vmatprep.subr.mxu0 %v1451_v1  ;;  %104 = vst [vmem:[#allocation2 + $0x8] sm:$0x1] %v102_v52  ;;  %v107_v54 = vld [vmem:[%s106_s30] sm:$0x1]  ;;  %s110_s5 = scalar_lea.vmem [#allocation6], %s1132_s28  ;;  %s1138_s13 = sld [smem:[#allocation3 + $0x4]] }
  0x3e   :  { %1243 = vmatpush3.msra.mxu0 %v1510_v5  ;;  %108 = vst [vmem:[#allocation2 + $0x9] sm:$0x1] %v107_v54  ;;  %v111_v57 = vld [vmem:[%s110_s5] sm:$0x1]  ;;  %s114_s0 = scalar_lea.vmem [#allocation6], %s1133_s29  ;;  %s1139_s14 = sld [smem:[#allocation3 + $0x84]] }
  0x3f   :  { %1258 = vmatprep.subr.mxu0 %v1451_v1  ;;  %v210_v15 = vld [vmem:[#allocation2] sm:$0xf]  ;;  %112 = vst [vmem:[#allocation2 + $0xa] sm:$0x1] %v111_v57  ;;  %s118_s9 = scalar_lea.vmem [#allocation6], %s1134_s6  ;;  %s1140_s15 = sld [smem:[#allocation3 + $0x104]] }
  0x40   :  { %v115_v58 = vld [vmem:[%s114_s0] sm:$0x1]  ;;  %s123_s10 = scalar_lea.vmem [#allocation6], %s1135_s7  ;;  %s1141_s18 = sld [smem:[#allocation3 + $0x184]] }
  0x41   :  { %116 = vst [vmem:[#allocation2 + $0xb] sm:$0x1] %v115_v58  ;;  %s127_s11 = scalar_lea.vmem [#allocation6], %s1136_s8  ;;  %s1142_s23 = sld [smem:[#allocation3 + $0x5]] }
  0x42   :  { %s131_s12 = scalar_lea.vmem [#allocation6], %s1137_s3  ;;  %s1143_s24 = sld [smem:[#allocation3 + $0x85]] }
  0x43   :  { %v323_v40 = vld [vmem:[#allocation2 + $0x4] sm:$0xf]  ;;  %s135_s19 = scalar_lea.vmem [#allocation6], %s1138_s13  ;;  %s1144_s25 = sld [smem:[#allocation3 + $0x105]] }
  0x44   :  { %s140_s20 = scalar_lea.vmem [#allocation6], %s1139_s14  ;;  %s1145_s26 = sld [smem:[#allocation3 + $0x185]] }
  0x45   :  { %s144_s21 = scalar_lea.vmem [#allocation6], %s1140_s15  ;;  %s1146_s30 = sld [smem:[#allocation3 + $0x6]] }
  0x46   :  { %s148_s22 = scalar_lea.vmem [#allocation6], %s1141_s18  ;;  %s1147_s5 = sld [smem:[#allocation3 + $0x86]] }
  0x47   :  { %s152_s27 = scalar_lea.vmem [#allocation6], %s1142_s23  ;;  %s1148_s0 = sld [smem:[#allocation3 + $0x106]] }
  0x48   :  { %v426_v3 = vld [vmem:[#allocation2 + $0x8] sm:$0xf]  ;;  %s157_s28 = scalar_lea.vmem [#allocation6], %s1143_s24  ;;  %s1149_s6 = sld [smem:[#allocation3 + $0x186]] }
  0x49   :  { %s161_s29 = scalar_lea.vmem [#allocation6], %s1144_s25  ;;  %s1153_s13 = sld [smem:[#allocation3 + $0x187]] }
  0x4a   :  { %s165_s2 = scalar_lea.vmem [#allocation6], %s1145_s26 }
  0x4b   :  { %s169_s7 = scalar_lea.vmem [#allocation6], %s1146_s30 }
  0x4c   :  { %s174_s8 = scalar_lea.vmem [#allocation6], %s1147_s5 }
  0x4d   :  { %s178_s3 = scalar_lea.vmem [#allocation6], %s1148_s0 }
  0xa0   :  { %v1536_v11 = vpop.permute.xlu0 %297 }
  0xf5   :  { %v281_v12 = vpop.f32.mrf.mxu0 }
  0xf6   :  { %v300_v13 = vadd.f32 %v1536_v11, %v281_v12  ;;  %v285_v16 = vadd.f32 %v281_v12, %v210_v15 }
  0xf7   :  { %v1224_v14 = vpop.f32.mrf.mxu0 }
  0xf8   :  { %302 = vrot.lane.b32.xlu0 %v300_v13, %s1453_s1  ;;  %v1155_v17 = vmul.f32 -1.442695, %v285_v16 }
  0xfa   :  { %1317 = vpow2.f32 %v1155_v17 }
  0xfc   :  { %318 = vrot.lane.b32.xlu0 %v209_v6, %s1454_s16 }
 0x107   :  { %v1318_v18 = vpop.eup %1317 }
 0x108   :  { %v289_v19 = vadd.f32 1.0, %v1318_v18  ;;  %v119_v18 = vld [vmem:[%s118_s9] sm:$0x1]  ;;  %s182_s9 = scalar_lea.vmem [#allocation6], %s1149_s6 }
 0x109   :  { %121 = vst [vmem:[#allocation2 + $0xc] sm:$0x1] %v119_v18 }
 0x10a   :  { %1319 = vrcp.f32 %v289_v19 }
 0x117   :  { %v1320_v20 = vpop.eup %1319 }
 0x118   :  { %v312_v27 = vsub.f32 1.0, %v1320_v20 }
 0x16a   :  { %v303_v21 = vpop.permute.xlu0 %302 }
 0x16b   :  { %v305_v22 = vmul.f32 %v1320_v20, %v303_v21 }
 0x16d   :  { %307 = vrot.lane.b32.xlu1 %v305_v22, %s1453_s1 }
 0x16e   :  { %v319_v26 = vpop.permute.xlu0 %318 }
 0x16f   :  { %v321_v31 = vmul.f32 %v1320_v20, %v319_v26  ;;  %v124_v20 = vld [vmem:[%s123_s10] sm:$0x1]  ;;  %s1150_s10 = sld [smem:[#allocation3 + $0x7]] }
 0x170   :  { %125 = vst [vmem:[#allocation2 + $0xd] sm:$0x1] %v124_v20 }
 0x175   :  { %s186_s14 = scalar_lea.vmem [#allocation6], %s1150_s10 }
 0x1df   :  { %v308_v23 = vpop.permute.xlu1 %307 }
 0x1e0   :  { %v310_v24 = vadd.f32 %v308_v23, %v210_v15  ;;  %v128_v23 = vld [vmem:[%s127_s11] sm:$0x1]  ;;  %s1151_s11 = sld [smem:[#allocation3 + $0x87]] }
 0x1e1   :  { %129 = vst [vmem:[#allocation2 + $0xe] sm:$0x1] %v128_v23 }
 0x1e2   :  { %1321 = vtanh.f32 %v310_v24  ;;  %v132_v24 = vld [vmem:[%s131_s12] sm:$0x1]  ;;  %s1152_s12 = sld [smem:[#allocation3 + $0x107]] }
 0x1e3   :  { %133 = vst [vmem:[#allocation2 + $0xf] sm:$0x1] %v132_v24 }
 0x1e6   :  { %s191_s15 = scalar_lea.vmem [#allocation6], %s1151_s11 }
 0x1e8   :  { %s195_s18 = scalar_lea.vmem [#allocation6], %s1152_s12 }
 0x1ea   :  { %v529_v30 = vld [vmem:[#allocation2 + $0xc] sm:$0xf] }
 0x1ef   :  { %v1322_v25 = vpop.eup %1321 }
 0x1f0   :  { %314 = vrot.lane.b32.xlu1 %v1322_v25, %s1455_s17 }
 0x262   :  { %v315_v29 = vpop.permute.xlu1 %314 }
 0x263   :  { %v317_v32 = vmul.f32 %v315_v29, %v312_v27 }
 0x265   :  { %v322_v35 = vadd.f32 %v321_v31, %v317_v32 }
 0x267   :  { %325 = vrot.lane.b32.xlu1 %v322_v35, %s1455_s17 }
 0x2d9   :  { %v326_v36 = vpop.permute.xlu1 %325 }
 0x2da   :  { %1234 = vmatmul.mubr.msk.f32.vlgmr.msra.gmra.mxu1 %vm211_vm1, %v326_v36 }
 0x2db   :  { %1248 = vmatpush3.msra.mxu1 %v1494_v0  ;;  %1255 = vmatprep.mubr.msk.f32.mxu1 %vm1452_vm0, %v1451_v1 }
 0x2dc   :  { %1249 = vmatprep.subr.mxu1 %v1451_v1 }
 0x2dd   :  { %1250 = vmatpush3.msra.mxu1 %v1497_v2 }
 0x2de   :  { %1251 = vmatprep.subr.mxu1 %v1451_v1 }
 0x2df   :  { %1252 = vmatpush3.msra.mxu1 %v1504_v4 }
 0x2e0   :  { %1253 = vmatprep.subr.mxu1 %v1451_v1 }
 0x2e1   :  { %1254 = vmatpush3.msra.mxu1 %v1510_v5 }
 0x2e2   :  { %1269 = vmatprep.subr.mxu1 %v1451_v1 }
 0x39a   :  { %v395_v37 = vpop.f32.mrf.mxu1 }
 0x39b   :  { %v406_v38 = vadd.f32 %v395_v37, %v1536_v11  ;;  %v399_v41 = vadd.f32 %v395_v37, %v323_v40 }
 0x39c   :  { %v1235_v39 = vpop.f32.mrf.mxu1 }
 0x39d   :  { %408 = vrot.lane.b32.xlu0 %v406_v38, %s1453_s1  ;;  %v1158_v42 = vmul.f32 -1.442695, %v399_v41 }
 0x39f   :  { %1323 = vpow2.f32 %v1158_v42  ;;  %v136_v42 = vld [vmem:[%s135_s19] sm:$0x1]  ;;  %s199_s19 = scalar_lea.vmem [#allocation6], %s1153_s13 }
 0x3a0   :  { %138 = vst [vmem:[#allocation2 + $0x10] sm:$0x1] %v136_v42 }
 0x3ac   :  { %v1324_v43 = vpop.eup %1323 }
 0x3ad   :  { %v403_v44 = vadd.f32 1.0, %v1324_v43 }
 0x3af   :  { %1325 = vrcp.f32 %v403_v44  ;;  %v141_v44 = vld [vmem:[%s140_s20] sm:$0x1] }
 0x3b0   :  { %142 = vst [vmem:[#allocation2 + $0x11] sm:$0x1] %v141_v44 }
 0x3bc   :  { %v1326_v45 = vpop.eup %1325 }
 0x3bd   :  { %v418_v51 = vsub.f32 1.0, %v1326_v45  ;;  %v424_v55 = vmul.f32 %v1326_v45, %v322_v35 }
 0x40f   :  { %v409_v46 = vpop.permute.xlu0 %408 }
 0x410   :  { %v411_v47 = vmul.f32 %v1326_v45, %v409_v46 }
 0x412   :  { %413 = vrot.lane.b32.xlu1 %v411_v47, %s1453_s1  ;;  %v145_v47 = vld [vmem:[%s144_s21] sm:$0x1] }
 0x413   :  { %146 = vst [vmem:[#allocation2 + $0x12] sm:$0x1] %v145_v47 }
 0x484   :  { %v414_v48 = vpop.permute.xlu1 %413 }
 0x485   :  { %v416_v49 = vadd.f32 %v414_v48, %v323_v40  ;;  %v149_v48 = vld [vmem:[%s148_s22] sm:$0x1] }
 0x486   :  { %150 = vst [vmem:[#allocation2 + $0x13] sm:$0x1] %v149_v48 }
 0x487   :  { %1327 = vtanh.f32 %v416_v49 }
 0x48d   :  { %v632_v54 = vld [vmem:[#allocation2 + $0x10] sm:$0xf] }
 0x494   :  { %v1328_v50 = vpop.eup %1327 }
 0x495   :  { %420 = vrot.lane.b32.xlu0 %v1328_v50, %s1455_s17 }
 0x507   :  { %v421_v53 = vpop.permute.xlu0 %420 }
 0x508   :  { %v423_v56 = vmul.f32 %v421_v53, %v418_v51 }
 0x50a   :  { %v425_v59 = vadd.f32 %v424_v55, %v423_v56 }
 0x50c   :  { %428 = vrot.lane.b32.xlu1 %v425_v59, %s1455_s17 }
 0x57e   :  { %v429_v60 = vpop.permute.xlu1 %428 }
 0x57f   :  { %1245 = vmatmul.mubr.msk.f32.vlgmr.msra.gmra.mxu0 %vm211_vm1, %v429_v60 }
 0x580   :  { %1259 = vmatpush3.msra.mxu0 %v1494_v0  ;;  %1266 = vmatprep.mubr.msk.f32.mxu0 %vm1452_vm0, %v1451_v1 }
 0x581   :  { %1260 = vmatprep.subr.mxu0 %v1451_v1 }
 0x582   :  { %1261 = vmatpush3.msra.mxu0 %v1497_v2 }
 0x583   :  { %1262 = vmatprep.subr.mxu0 %v1451_v1 }
 0x584   :  { %1263 = vmatpush3.msra.mxu0 %v1504_v4 }
 0x585   :  { %1264 = vmatprep.subr.mxu0 %v1451_v1 }
 0x586   :  { %1265 = vmatpush3.msra.mxu0 %v1510_v5 }
 0x587   :  { %1280 = vmatprep.subr.mxu0 %v1451_v1 }
 0x63f   :  { %v498_v61 = vpop.f32.mrf.mxu0 }
 0x640   :  { %v509_v62 = vadd.f32 %v498_v61, %v1536_v11  ;;  %v502_v6 = vadd.f32 %v498_v61, %v426_v3 }
 0x641   :  { %v1246_v63 = vpop.f32.mrf.mxu0 }
 0x642   :  { %511 = vrot.lane.b32.xlu0 %v509_v62, %s1453_s1  ;;  %v1160_v7 = vmul.f32 -1.442695, %v502_v6 }
 0x644   :  { %1329 = vpow2.f32 %v1160_v7  ;;  %v153_v7 = vld [vmem:[%s152_s27] sm:$0x1] }
 0x645   :  { %155 = vst [vmem:[#allocation2 + $0x14] sm:$0x1] %v153_v7 }
 0x651   :  { %v1330_v8 = vpop.eup %1329 }
 0x652   :  { %v506_v9 = vadd.f32 1.0, %v1330_v8 }
 0x654   :  { %1331 = vrcp.f32 %v506_v9  ;;  %v158_v9 = vld [vmem:[%s157_s28] sm:$0x1] }
 0x655   :  { %159 = vst [vmem:[#allocation2 + $0x15] sm:$0x1] %v158_v9 }
 0x661   :  { %v1332_v10 = vpop.eup %1331 }
 0x662   :  { %v521_v17 = vsub.f32 1.0, %v1332_v10  ;;  %v527_v21 = vmul.f32 %v1332_v10, %v425_v59 }
 0x6b4   :  { %v512_v12 = vpop.permute.xlu0 %511 }
 0x6b5   :  { %v514_v13 = vmul.f32 %v1332_v10, %v512_v12 }
 0x6b7   :  { %516 = vrot.lane.b32.xlu1 %v514_v13, %s1453_s1  ;;  %v162_v13 = vld [vmem:[%s161_s29] sm:$0x1] }
 0x6b8   :  { %163 = vst [vmem:[#allocation2 + $0x16] sm:$0x1] %v162_v13  ;;  %v1171_v13 = vld [vmem:[#allocation9 + $0x21] ss:$0 sm:$0xff] }
 0x729   :  { %v517_v14 = vpop.permute.xlu1 %516 }
 0x72a   :  { %v519_v15 = vadd.f32 %v517_v14, %v426_v3  ;;  %v166_v14 = vld [vmem:[%s165_s2] sm:$0x1] }
 0x72b   :  { %167 = vst [vmem:[#allocation2 + $0x17] sm:$0x1] %v166_v14 }
 0x72c   :  { %1333 = vtanh.f32 %v519_v15 }
 0x739   :  { %v1334_v16 = vpop.eup %1333 }
 0x73a   :  { %523 = vrot.lane.b32.xlu0 %v1334_v16, %s1455_s17 }
 0x7ac   :  { %v524_v19 = vpop.permute.xlu0 %523 }
 0x7ad   :  { %v526_v22 = vmul.f32 %v524_v19, %v521_v17 }
 0x7af   :  { %v528_v25 = vadd.f32 %v527_v21, %v526_v22 }
 0x7b1   :  { %531 = vrot.lane.b32.xlu1 %v528_v25, %s1455_s17 }
 0x823   :  { %v532_v26 = vpop.permute.xlu1 %531 }
 0x824   :  { %1256 = vmatmul.mubr.msk.f32.vlgmr.msra.gmra.mxu1 %vm211_vm1, %v532_v26 }
 0x825   :  { %1270 = vmatpush3.msra.mxu1 %v1494_v0  ;;  %1277 = vmatprep.mubr.msk.f32.mxu1 %vm1452_vm0, %v1451_v1 }
 0x826   :  { %1271 = vmatprep.subr.mxu1 %v1451_v1 }
 0x827   :  { %1272 = vmatpush3.msra.mxu1 %v1497_v2 }
 0x828   :  { %1273 = vmatprep.subr.mxu1 %v1451_v1 }
 0x829   :  { %1274 = vmatpush3.msra.mxu1 %v1504_v4 }
 0x82a   :  { %1275 = vmatprep.subr.mxu1 %v1451_v1 }
 0x82b   :  { %1276 = vmatpush3.msra.mxu1 %v1510_v5 }
 0x82c   :  { %1291 = vmatprep.subr.mxu1 %v1451_v1 }
 0x8e4   :  { %v601_v27 = vpop.f32.mrf.mxu1 }
 0x8e5   :  { %v612_v28 = vadd.f32 %v601_v27, %v1536_v11  ;;  %v605_v31 = vadd.f32 %v601_v27, %v529_v30  ;;  %v170_v27 = vld [vmem:[%s169_s7] sm:$0x1] }
 0x8e6   :  { %v1257_v29 = vpop.f32.mrf.mxu1  ;;  %172 = vst [vmem:[#allocation2 + $0x18] sm:$0x1] %v170_v27 }
 0x8e7   :  { %614 = vrot.lane.b32.xlu0 %v612_v28, %s1453_s1  ;;  %v1162_v32 = vmul.f32 -1.442695, %v605_v31  ;;  %v175_v29 = vld [vmem:[%s174_s8] sm:$0x1] }
 0x8e8   :  { %176 = vst [vmem:[#allocation2 + $0x19] sm:$0x1] %v175_v29 }
 0x8e9   :  { %1335 = vpow2.f32 %v1162_v32  ;;  %v179_v32 = vld [vmem:[%s178_s3] sm:$0x1] }
 0x8ea   :  { %180 = vst [vmem:[#allocation2 + $0x1a] sm:$0x1] %v179_v32 }
 0x8f6   :  { %v1336_v33 = vpop.eup %1335 }
 0x8f7   :  { %v609_v34 = vadd.f32 1.0, %v1336_v33  ;;  %v183_v33 = vld [vmem:[%s182_s9] sm:$0x1] }
 0x8f8   :  { %184 = vst [vmem:[#allocation2 + $0x1b] sm:$0x1] %v183_v33 }
 0x8f9   :  { %1337 = vrcp.f32 %v609_v34 }
 0x906   :  { %v1338_v35 = vpop.eup %1337 }
 0x907   :  { %v624_v41 = vsub.f32 1.0, %v1338_v35  ;;  %v630_v45 = vmul.f32 %v1338_v35, %v528_v25 }
 0x959   :  { %v615_v36 = vpop.permute.xlu0 %614 }
 0x95a   :  { %v617_v37 = vmul.f32 %v1338_v35, %v615_v36 }
 0x95c   :  { %619 = vrot.lane.b32.xlu1 %v617_v37, %s1453_s1 }
 0x9ce   :  { %v620_v38 = vpop.permute.xlu1 %619 }
 0x9cf   :  { %v622_v39 = vadd.f32 %v620_v38, %v529_v30 }
 0x9d1   :  { %1339 = vtanh.f32 %v622_v39  ;;  %v838_v39 = vld [vmem:[#allocation2 + $0x18] sm:$0xf] }
 0x9de   :  { %v1340_v40 = vpop.eup %1339 }
 0x9df   :  { %626 = vrot.lane.b32.xlu0 %v1340_v40, %s1455_s17 }
 0xa51   :  { %v627_v43 = vpop.permute.xlu0 %626 }
 0xa52   :  { %v629_v46 = vmul.f32 %v627_v43, %v624_v41 }
 0xa54   :  { %v631_v49 = vadd.f32 %v630_v45, %v629_v46 }
 0xa56   :  { %634 = vrot.lane.b32.xlu1 %v631_v49, %s1455_s17 }
 0xac8   :  { %v635_v50 = vpop.permute.xlu1 %634 }
 0xac9   :  { %1267 = vmatmul.mubr.msk.f32.vlgmr.msra.gmra.mxu0 %vm211_vm1, %v635_v50 }
 0xaca   :  { %1281 = vmatpush3.msra.mxu0 %v1494_v0  ;;  %1288 = vmatprep.mubr.msk.f32.mxu0 %vm1452_vm0, %v1451_v1 }
 0xacb   :  { %1282 = vmatprep.subr.mxu0 %v1451_v1 }
 0xacc   :  { %1283 = vmatpush3.msra.mxu0 %v1497_v2 }
 0xacd   :  { %1284 = vmatprep.subr.mxu0 %v1451_v1 }
 0xace   :  { %1285 = vmatpush3.msra.mxu0 %v1504_v4 }
 0xacf   :  { %1286 = vmatprep.subr.mxu0 %v1451_v1 }
 0xad0   :  { %1287 = vmatpush3.msra.mxu0 %v1510_v5 }
 0xb89   :  { %v704_v51 = vpop.f32.mrf.mxu0 }
 0xb8a   :  { %v715_v52 = vadd.f32 %v704_v51, %v1536_v11  ;;  %v708_v55 = vadd.f32 %v704_v51, %v632_v54  ;;  %v187_v51 = vld [vmem:[%s186_s14] sm:$0x1] }
 0xb8b   :  { %v1268_v53 = vpop.f32.mrf.mxu0  ;;  %189 = vst [vmem:[#allocation2 + $0x1c] sm:$0x1] %v187_v51 }
 0xb8c   :  { %717 = vrot.lane.b32.xlu0 %v715_v52, %s1453_s1  ;;  %v1164_v56 = vmul.f32 -1.442695, %v708_v55  ;;  %v192_v53 = vld [vmem:[%s191_s15] sm:$0x1] }
 0xb8d   :  { %193 = vst [vmem:[#allocation2 + $0x1d] sm:$0x1] %v192_v53 }
 0xb8e   :  { %1341 = vpow2.f32 %v1164_v56  ;;  %v196_v56 = vld [vmem:[%s195_s18] sm:$0x1] }
 0xb8f   :  { %197 = vst [vmem:[#allocation2 + $0x1e] sm:$0x1] %v196_v56 }
 0xb9b   :  { %v1342_v57 = vpop.eup %1341 }
 0xb9c   :  { %v712_v58 = vadd.f32 1.0, %v1342_v57  ;;  %v200_v57 = vld [vmem:[%s199_s19] sm:$0x1] }
 0xb9d   :  { %201 = vst [vmem:[#allocation2 + $0x1f] sm:$0x1] %v200_v57 }
 0xb9e   :  { %1343 = vrcp.f32 %v712_v58 }
 0xbab   :  { %v1344_v59 = vpop.eup %1343 }
 0xbac   :  { %v727_v6 = vsub.f32 1.0, %v1344_v59  ;;  %v733_v10 = vmul.f32 %v1344_v59, %v631_v49 }
 0xbfe   :  { %v718_v60 = vpop.permute.xlu0 %717 }
 0xbff   :  { %v720_v61 = vmul.f32 %v1344_v59, %v718_v60 }
 0xc01   :  { %722 = vrot.lane.b32.xlu1 %v720_v61, %s1453_s1 }
 0xc73   :  { %v723_v62 = vpop.permute.xlu1 %722 }
 0xc74   :  { %v725_v63 = vadd.f32 %v723_v62, %v632_v54 }
 0xc76   :  { %1345 = vtanh.f32 %v725_v63  ;;  %v941_v63 = vld [vmem:[#allocation2 + $0x1c] sm:$0xf] }
 0xc83   :  { %v1346_v3 = vpop.eup %1345 }
 0xc84   :  { %729 = vrot.lane.b32.xlu0 %v1346_v3, %s1455_s17 }
 0xcf6   :  { %v730_v8 = vpop.permute.xlu0 %729 }
 0xcf7   :  { %v732_v12 = vmul.f32 %v730_v8, %v727_v6 }
 0xcf9   :  { %v734_v15 = vadd.f32 %v733_v10, %v732_v12 }
 0xcfb   :  { %737 = vrot.lane.b32.xlu1 %v734_v15, %s1455_s17 }
 0xd6d   :  { %v738_v16 = vpop.permute.xlu1 %737 }
 0xd6e   :  { %1278 = vmatmul.mubr.msk.f32.vlgmr.msra.gmra.mxu1 %vm211_vm1, %v738_v16 }
 0xd6f   :  { %1292 = vmatpush3.msra.mxu1 %v1494_v0  ;;  %1299 = vmatprep.mubr.msk.f32.mxu1 %vm1452_vm0, %v1451_v1  ;;  %v735_v0 = vld [vmem:[#allocation2 + $0x14] sm:$0xf] }
 0xd70   :  { %1293 = vmatprep.subr.mxu1 %v1451_v1 }
 0xd71   :  { %1294 = vmatpush3.msra.mxu1 %v1497_v2 }
 0xd72   :  { %1295 = vmatprep.subr.mxu1 %v1451_v1 }
 0xd73   :  { %1296 = vmatpush3.msra.mxu1 %v1504_v4 }
 0xd74   :  { %1297 = vmatprep.subr.mxu1 %v1451_v1 }
 0xd75   :  { %1298 = vmatpush3.msra.mxu1 %v1510_v5 }
 0xe2e   :  { %v807_v17 = vpop.f32.mrf.mxu1 }
 0xe2f   :  { %v818_v18 = vadd.f32 %v807_v17, %v1536_v11  ;;  %v811_v20 = vadd.f32 %v807_v17, %v735_v0 }
 0xe30   :  { %v1279_v19 = vpop.f32.mrf.mxu1 }
 0xe31   :  { %820 = vrot.lane.b32.xlu0 %v818_v18, %s1453_s1  ;;  %v1166_v21 = vmul.f32 -1.442695, %v811_v20 }
 0xe33   :  { %1347 = vpow2.f32 %v1166_v21 }
 0xe40   :  { %v1348_v22 = vpop.eup %1347 }
 0xe41   :  { %v815_v2 = vadd.f32 1.0, %v1348_v22 }
 0xe43   :  { %1349 = vrcp.f32 %v815_v2 }
 0xe50   :  { %v1350_v23 = vpop.eup %1349 }
 0xe51   :  { %v830_v26 = vsub.f32 1.0, %v1350_v23  ;;  %v836_v30 = vmul.f32 %v1350_v23, %v734_v15 }
 0xea3   :  { %v821_v24 = vpop.permute.xlu0 %820 }
 0xea4   :  { %v823_v4 = vmul.f32 %v1350_v23, %v821_v24  ;;  %v1456_v23 = vmov 0   ;;  %v1172_v24 = vld [vmem:[#allocation9 + $0x22] ss:$0 sm:$0xff] }
 0xea5   :  { %1316 = vset.pattern.permute.xlu0 %v1456_v23 }
 0xea6   :  { %825 = vrot.lane.b32.xlu1 %v823_v4, %s1453_s1 }
 0xf18   :  { %v826_v1 = vpop.permute.xlu1 %825 }
 0xf19   :  { %v828_v5 = vadd.f32 %v826_v1, %v735_v0 }
 0xf1b   :  { %1351 = vtanh.f32 %v828_v5 }
 0xf28   :  { %v1352_v25 = vpop.eup %1351 }
 0xf29   :  { %832 = vrot.lane.b32.xlu0 %v1352_v25, %s1455_s17 }
 0xf9b   :  { %v833_v28 = vpop.permute.xlu0 %832 }
 0xf9c   :  { %v835_v31 = vmul.f32 %v833_v28, %v830_v26 }
 0xf9e   :  { %v837_v34 = vadd.f32 %v836_v30, %v835_v31 }
 0xfa0   :  { %840 = vrot.lane.b32.xlu1 %v837_v34, %s1455_s17 }
0x1012   :  { %v841_v35 = vpop.permute.xlu1 %840 }
0x1013   :  { %1289 = vmatmul.mubr.msk.f32.vlgmr.msra.gmra.mxu0 %vm211_vm1, %v841_v35 }
0x10d3   :  { %v910_v36 = vpop.f32.mrf.mxu0 }
0x10d4   :  { %v921_v37 = vadd.f32 %v910_v36, %v1536_v11  ;;  %v914_v40 = vadd.f32 %v910_v36, %v838_v39 }
0x10d5   :  { %v1290_v38 = vpop.f32.mrf.mxu0 }
0x10d6   :  { %923 = vrot.lane.b32.xlu0 %v921_v37, %s1453_s1  ;;  %v1168_v41 = vmul.f32 -1.442695, %v914_v40 }
0x10d8   :  { %1353 = vpow2.f32 %v1168_v41 }
0x10e5   :  { %v1354_v42 = vpop.eup %1353 }
0x10e6   :  { %v918_v43 = vadd.f32 1.0, %v1354_v42 }
0x10e8   :  { %1355 = vrcp.f32 %v918_v43 }
0x10f5   :  { %v1356_v44 = vpop.eup %1355 }
0x10f6   :  { %v933_v50 = vsub.f32 1.0, %v1356_v44  ;;  %v939_v54 = vmul.f32 %v1356_v44, %v837_v34 }
0x1148   :  { %v924_v45 = vpop.permute.xlu0 %923 }
0x1149   :  { %v926_v46 = vmul.f32 %v1356_v44, %v924_v45 }
0x114b   :  { %928 = vrot.lane.b32.xlu1 %v926_v46, %s1453_s1 }
0x11bd   :  { %v929_v47 = vpop.permute.xlu1 %928 }
0x11be   :  { %v931_v48 = vadd.f32 %v929_v47, %v838_v39 }
0x11c0   :  { %1357 = vtanh.f32 %v931_v48 }
0x11cd   :  { %v1358_v49 = vpop.eup %1357 }
0x11ce   :  { %935 = vrot.lane.b32.xlu0 %v1358_v49, %s1455_s17 }
0x1240   :  { %v936_v52 = vpop.permute.xlu0 %935 }
0x1241   :  { %v938_v55 = vmul.f32 %v936_v52, %v933_v50 }
0x1243   :  { %v940_v58 = vadd.f32 %v939_v54, %v938_v55 }
0x1245   :  { %943 = vrot.lane.b32.xlu1 %v940_v58, %s1455_s17 }
0x12b7   :  { %v944_v59 = vpop.permute.xlu1 %943 }
0x12b8   :  { %1300 = vmatmul.mubr.msk.f32.vlgmr.msra.gmra.mxu1 %vm211_vm1, %v944_v59 }
0x1378   :  { %v1013_v60 = vpop.f32.mrf.mxu1 }
0x1379   :  { %v1024_v61 = vadd.f32 %v1013_v60, %v1536_v11  ;;  %v1017_v3 = vadd.f32 %v1013_v60, %v941_v63 }
0x137a   :  { %v1301_v62 = vpop.f32.mrf.mxu1 }
0x137b   :  { %1026 = vrot.lane.b32.xlu0 %v1024_v61, %s1453_s1  ;;  %v1170_v6 = vmul.f32 -1.442695, %v1017_v3 }
0x137d   :  { %1359 = vpow2.f32 %v1170_v6 }
0x138a   :  { %v1360_v7 = vpop.eup %1359 }
0x138b   :  { %v1021_v8 = vadd.f32 1.0, %v1360_v7 }
0x138d   :  { %1361 = vrcp.f32 %v1021_v8 }
0x139a   :  { %v1362_v9 = vpop.eup %1361 }
0x139b   :  { %v1036_v16 = vsub.f32 1.0, %v1362_v9  ;;  %v1042_v19 = vmul.f32 %v1362_v9, %v940_v58 }
0x13ed   :  { %v1027_v10 = vpop.permute.xlu0 %1026 }
0x13ee   :  { %v1029_v12 = vmul.f32 %v1362_v9, %v1027_v10 }
0x13f0   :  { %1031 = vrot.lane.b32.xlu1 %v1029_v12, %s1453_s1 }
0x13f4   :  { %1049 = vrot.lane.b32.xlu1 %v1171_v13, %s1454_s16 }
0x1462   :  { %v1032_v14 = vpop.permute.xlu1 %1031 }
0x1463   :  { %v1034_v11 = vadd.f32 %v1032_v14, %v941_v63 }
0x1465   :  { %1363 = vtanh.f32 %v1034_v11 }
0x1466   :  { %v1050_v0 = vpop.permute.xlu1 %1049 }
0x1472   :  { %v1364_v15 = vpop.eup %1363 }
0x1473   :  { %1038 = vrot.lane.b32.xlu0 %v1364_v15, %s1455_s17 }
0x14e5   :  { %v1039_v17 = vpop.permute.xlu0 %1038 }
0x14e6   :  { %v1041_v18 = vmul.f32 %v1039_v17, %v1036_v16 }
0x14e8   :  { %v1043_v20 = vadd.f32 %v1042_v19, %v1041_v18 }
0x14ea   :  { %v1052_v21 = vmul.f32 %v1050_v0, %v1043_v20 }
0x14ec   :  { %1054 = vrot.lane.b32.xlu0 %v1052_v21, %s1455_s17 }
0x155e   :  { %v1055_v22 = vpop.permute.xlu0 %1054 }
0x155f   :  { %v1058_v2 = vsel %vm1057_vm2, %v1055_v22, 0.0 }
0x1560   :  { %1059 = vadd.xlane.f32.xlu1 %v1058_v2 }
0x15e9   :  { %v1060_v4 = vpop.xlane.xlu1 %1059 }
0x15ea   :  { %v1065_v1 = vadd.f32 %v1172_v24, %v1060_v4 }
0x15ec   :  { %v1173_v5 = vmul.f32 -1.442695, %v1065_v1 }
0x15ee   :  { %1365 = vpow2.f32 %v1173_v5 }
0x15fb   :  { %v1366_v25 = vpop.eup %1365 }
0x15fc   :  { %v1069_v26 = vadd.f32 1.0, %v1366_v25 }
0x15fe   :  { %1367 = vrcp.f32 %v1069_v26 }
0x160b   :  { %v1368_v27 = vpop.eup %1367 }
0x160c   :  { %1079 = vperm.xlu0 %1316, %v1368_v27  }
0x1610   :  { %1073 = vrot.lane.b32.xlu0 %v1043_v20, %s1455_s17 }
0x1687   :  { %v1080_v28 = vpop.permute.xlu0 %1079 }
0x168b   :  { %v1074_v29 = vpop.permute.xlu0 %1073 }
0x168c   :  { %1076 = vst.msk [vmem:[%s1648_s4] sm:$0xf] %vm1057_vm2, %v1074_v29 }
0x168d   :  { %1083 = vst.msk [vmem:[%s1648_s4] sm:$0xf] %vm1082_vm3, %v1080_v28 }
0x168e   :  { %1088 = vsyncpa [#allocation4], 1 }
0x168f   :  { %1089 = vsyncpa [#allocation8], 1 }
0x1690   :  { %1090 = vsyncpa [#allocation5], 1 }

</bundles_post_ra>
